<compile_context>
chip_gen: v7x
topology: tpu7x:2x2x1
jax: 0.10.0
libtpu: 0.0.40
codegen_flags: <defaults>
</compile_context>

<pallas_src>
import functools

import jax
import jax.numpy as jnp
from jax import lax
from jax.experimental import pallas as pl
from jax.experimental.pallas import tpu as pltpu


def _attention_kernel(x_ref, wkv_ref, sc_ref, sh_ref, o_ref, kv_ref, *,
                      key_channels, block_batch, block_len, softmax_bf16):
    # x_ref : (Cin, B*L)     channel-first tokens of B pyramid blocks (lane-dense)
    # wkv   : (Ck+Co, Cin)   fused key | (value @ W) projection, channel-first
    # sc/sh : (Ck+Co, 1)     folded BN*ck^-0.25 scale/shift (key rows), W-folded bias (value rows)
    # o_ref : (B, Co, L)     per-block channel-first output
    # kv_ref: (B, Ck+Co, L)  VMEM scratch holding the projected keys/values of the B blocks
    sim_dtype = jnp.bfloat16 if softmax_bf16 else jnp.float32
    mm_dtype = jnp.bfloat16   # MXU is bf16-native on every generation; accumulate in f32

    # ---- one fused projection across all B pyramid blocks (amortizes MXU weight pushes,
    #      applies the BN fold once instead of B times) ----
    kv = lax.dot_general(wkv_ref[...], x_ref[...], (((1,), (0,)), ((), ())),
                         preferred_element_type=jnp.float32)             # (Ck+Co, B*L)
    kv = kv * sc_ref[...] + sh_ref[...]
    # LeakyReLU(0.01) on the key rows only (f_query = f_key shares weights; value rows untouched)
    rows = lax.broadcasted_iota(jnp.int32, kv.shape, 0)
    kv = jnp.where((rows < key_channels) & (kv < 0), 0.01 * kv, kv)
    # Static, per-block slices into the scratch so the attention loop only does leading-axis
    # (non-tiled) dynamic indexing.
    for bb in range(block_batch):
        kv_ref[bb] = kv[:, bb * block_len:(bb + 1) * block_len]

    # ---- per-block attention: fori_loop bounds the live range of the (L, L) temporaries ----
    def body(b, carry):
        kvb = kv_ref[b]                                                  # (Ck+Co, L)
        k = kvb[:key_channels, :]                                        # (Ck, L)
        v = kvb[key_channels:, :]                                        # (Co, L)

        # sim[l, m] = q[:, l] . k[:, m]   (q = k; 1/sqrt(Ck) already folded into k)
        sim = lax.dot_general(k, k, (((0,), (0,)), ((), ())),
                              preferred_element_type=jnp.float32)        # (L, L) f32
        sim = sim - jnp.max(sim, axis=-1, keepdims=True)

        # Row softmax; exp / row-sum / p run in bf16 on v6e/v7x, f32 elsewhere.
        e = jnp.exp(sim.astype(sim_dtype))
        denom = jnp.sum(e, axis=-1, keepdims=True)
        inv = pl.reciprocal(denom.astype(jnp.float32), approx=True)      # EUP slot
        p = e * inv.astype(e.dtype)

        # out[o, l] = sum_m v[o, m] * p[l, m]; W conv + all biases already folded into v.
        out = lax.dot_general(v.astype(mm_dtype), p.astype(mm_dtype),
                              (((1,), (1,)), ((), ())),
                              preferred_element_type=jnp.float32)        # (Co, L)
        o_ref[b] = out.astype(o_ref.dtype)
        return carry

    lax.fori_loop(0, block_batch, body, 0)


def _tpu_device_kind():
    try:
        return jax.devices()[0].device_kind.lower()
    except Exception:
        return ""


def _vmem_capacity_bytes(kind):
    if ("v7" in kind) or ("tpu7" in kind):
        return 64 * 2**20
    if ("v5" in kind) or ("v6" in kind):
        return 128 * 2**20
    return 32 * 2**20          # conservative default for older / unknown parts


def _use_bf16_softmax(kind):
    # bf16 VPU/EUP paths exist on v6e / v7x; keep elementwise math in f32 on v5e and older.
    return ("v6" in kind) or ("v7" in kind) or ("tpu7" in kind)


def _choose_block_batch(nb, L, per_block_bytes, vmem_budget):
    """Pyramid blocks per grid step.  Prefer: exact division of nb (no padded blocks),
    lane-aligned B*L (multiple of 128), >= 2 grid steps (so the "parallel" axis can be split
    across TensorCores), and a VMEM bound on the per-step working set."""
    max_by_mem = max(1, int(vmem_budget // max(per_block_bytes, 1)))
    target_max = max(1, nb // 2) if nb >= 2 else 1
    hi = max(1, min(target_max, max_by_mem, nb, 16))
    for b in range(hi, 0, -1):                       # exact division + lane aligned
        if nb % b == 0 and (b * L) % 128 == 0:
            return b
    for b in range(hi, 0, -1):                       # lane aligned, may need padded blocks
        if (b * L) % 128 == 0:
            return b
    return nb                                        # single step; block == full array (legal)


def pyramid_self_attention(x_nchw, params, *, scale=1):
    """x_nchw: (N, Cin, H, W) float32.  Returns (N, Cout, H, W)."""
    n, cin, h, w = x_nchw.shape
    # TODO(synk): the PyTorch module lets the last pyramid row/column absorb the remainder when
    # H or W is not divisible by `scale`; ragged pyramid blocks are not supported here.
    assert h % scale == 0 and w % scale == 0, "kernel supports evenly divisible pyramid blocks"
    bh, bw_sp = h // scale, w // scale
    L = bh * bw_sp

    ck = params["wk"].shape[1]
    co = params["ww"].shape[1]

    kind = _tpu_device_kind()
    vmem_cap = _vmem_capacity_bytes(kind)
    softmax_bf16 = _use_bf16_softmax(kind)
    sm_itemsize = 2 if softmax_bf16 else 4

    # The (L, L) similarity matrix is materialized one pyramid block at a time.
    # TODO(synk): large L (realistic OCNet resolutions) needs key-axis tiling with an online
    # softmax (flash pattern) instead of a materialized (L, L) matrix; not implemented here.
    if 4 * L * L * sm_itemsize > vmem_cap // 2:
        raise NotImplementedError(
            "per-block (L, L) softmax does not fit VMEM; needs online-softmax key tiling")

    # ---- algebraic folds, done once in the wrapper ----
    s_fold = float(ck) ** -0.25                      # ck^-0.25 on k -> ck^-0.5 on sim (q = k)
    wv_eff = params["wv"] @ params["ww"]             # (Cin, Co): value proj with W folded in
    b_eff = params["bv"] @ params["ww"] + params["bw"]          # (Co,): relies on softmax rows = 1
    w_kv = jnp.concatenate([params["wk"].T, wv_eff.T], axis=0)  # (Ck+Co, Cin)
    sc = jnp.concatenate([params["bn_scale"] * s_fold,
                          jnp.ones((co,), jnp.float32)], axis=0)[:, None]      # (Ck+Co, 1)
    sh = jnp.concatenate([params["bn_shift"] * s_fold, b_eff], axis=0)[:, None]

    # ---- NCHW -> channel-first tokens of all pyramid blocks: (Cin, nb*L) ----
    nb = n * scale * scale
    x_tok = x_nchw.reshape(n, cin, scale, bh, scale, bw_sp)
    x_tok = jnp.transpose(x_tok, (1, 0, 2, 4, 3, 5))            # (Cin, N, si, sj, bh, bw)
    x_tok = x_tok.reshape(cin, nb * L)

    per_block_bytes = (2 * (cin + co) + (ck + co)) * L * 4
    fixed_bytes = 4 * L * L * sm_itemsize + 2 * 2**20
    budget = max(per_block_bytes, vmem_cap // 4 - fixed_bytes)
    B = _choose_block_batch(nb, L, per_block_bytes, budget)
    nsteps = pl.cdiv(nb, B)
    nb_pad = nsteps * B
    if nb_pad != nb:
        x_tok = jnp.pad(x_tok, ((0, 0), (0, (nb_pad - nb) * L)))

    kernel = functools.partial(_attention_kernel, key_channels=ck, block_batch=B,
                               block_len=L, softmax_bf16=softmax_bf16)

    # Generation-aware VMEM limit: double-buffered tiles + scratch + one block's softmax
    # temporaries + weights, with headroom; lower cap on 64 MiB-class parts.
    vmem_est = (2 * B * (cin + co) * L * 4
                + (ck + co) * B * L * 4
                + 4 * L * L * sm_itemsize
                + (ck + co) * (cin + 2) * 4)
    vmem_budget_cap = 40 * 2**20 if vmem_cap <= 64 * 2**20 else 96 * 2**20
    vmem_limit = int(min(vmem_budget_cap, max(16 * 2**20, 2 * vmem_est)))

    out_tok = pl.pallas_call(
        kernel,
        out_shape=jax.ShapeDtypeStruct((nb_pad, co, L), jnp.float32),
        grid_spec=pltpu.PrefetchScalarGridSpec(
            num_scalar_prefetch=0,
            grid=(nsteps,),
            in_specs=[
                pl.BlockSpec((cin, B * L), lambda g: (0, g)),   # lane-dense token slab
                pl.BlockSpec(w_kv.shape, lambda g: (0, 0)),
                pl.BlockSpec(sc.shape, lambda g: (0, 0)),
                pl.BlockSpec(sh.shape, lambda g: (0, 0)),
            ],
            out_specs=pl.BlockSpec((B, co, L), lambda g: (g, 0, 0)),
            scratch_shapes=[pltpu.VMEM((B, ck + co, L), jnp.float32)],
        ),
        compiler_params=pltpu.CompilerParams(
            dimension_semantics=("parallel",),
            vmem_limit_bytes=vmem_limit,
        ),
    )(x_tok, w_kv, sc, sh)

    # ---- per-block channel-first tokens -> NCHW ----
    out_tok = out_tok[:nb]
    out = out_tok.reshape(n, scale, scale, co, bh, bw_sp)
    out = jnp.transpose(out, (0, 3, 1, 4, 2, 5)).reshape(n, co, h, w)
    return out


def _reference_forward(x_nchw, params, *, scale=1):
    """Plain-JAX replica of the PyTorch forward (for verification)."""
    n, cin, h, w = x_nchw.shape
    bh, bw_sp = h // scale, w // scale
    ck = params["wk"].shape[1]

    x_nhwc = jnp.transpose(x_nchw, (0, 2, 3, 1))
    key = x_nhwc @ params["wk"]
    key = key * params["bn_scale"] + params["bn_shift"]
    key = jnp.where(key >= 0, key, 0.01 * key)
    query = key
    value = x_nhwc @ params["wv"] + params["bv"]

    rows = []
    for i in range(scale):
        row = []
        for j in range(scale):
            sl = (slice(None), slice(i * bh, (i + 1) * bh), slice(j * bw_sp, (j + 1) * bw_sp))
            q = query[sl].reshape(n, bh * bw_sp, -1)
            k = key[sl].reshape(n, bh * bw_sp, -1)
            v = value[sl].reshape(n, bh * bw_sp, -1)
            sim = jnp.einsum("nlc,nmc->nlm", q, k) * (ck ** -0.5)
            sim = jax.nn.softmax(sim, axis=-1)
            ctx = jnp.einsum("nlm,nmc->nlc", sim, v).reshape(n, bh, bw_sp, -1)
            row.append(ctx)
        rows.append(jnp.concatenate(row, axis=2))
    context = jnp.concatenate(rows, axis=1)
    out = context @ params["ww"] + params["bw"]
    return jnp.transpose(out, (0, 3, 1, 2))


def make_params(key, in_channels, key_channels, value_channels, out_channels):
    ks = jax.random.split(key, 8)
    params = {
        # f_key conv: torch weight (Ck, Cin, 1, 1) -> (Cin, Ck), no bias
        "wk": 0.1 * jax.random.normal(ks[0], (in_channels, key_channels), jnp.float32),
        # f_value conv: (Cv, Cin, 1, 1) -> (Cin, Cv), with bias
        "wv": 0.1 * jax.random.normal(ks[1], (in_channels, value_channels), jnp.float32),
        "bv": 0.05 * jax.random.normal(ks[2], (value_channels,), jnp.float32),
        # W conv: (Co, Cv, 1, 1) -> (Cv, Co), bias initialized to 0
        "ww": 0.1 * jax.random.normal(ks[3], (value_channels, out_channels), jnp.float32),
        "bw": jnp.zeros((out_channels,), jnp.float32),
    }
    # ABN(key_channels): inference-mode BatchNorm folded into scale/shift, then LeakyReLU(0.01).
    # TODO(synk): training-mode ABN (batch statistics) has no clean single-kernel equivalent.
    gamma = 1.0 + 0.1 * jax.random.normal(ks[4], (key_channels,), jnp.float32)
    beta = 0.05 * jax.random.normal(ks[5], (key_channels,), jnp.float32)
    mean = 0.1 * jax.random.normal(ks[6], (key_channels,), jnp.float32)
    var = jnp.abs(jax.random.normal(ks[7], (key_channels,), jnp.float32)) + 0.5
    eps = 1e-5
    bn_scale = gamma / jnp.sqrt(var + eps)
    params["bn_scale"] = bn_scale
    params["bn_shift"] = beta - mean * bn_scale
    return params


if __name__ == "__main__":
    in_channels = 4
    key_channels = 8
    value_channels = 8
    out_channels = in_channels  # out_channels=None in the module -> in_channels
    N, H, W = 2, 16, 16

    root = jax.random.PRNGKey(0)
    kx, kp = jax.random.split(root)
    x = jax.random.normal(kx, (N, in_channels, H, W), jnp.float32)
    params = make_params(kp, in_channels, key_channels, value_channels, out_channels)

    # Tolerance: approx reciprocal + bf16 MXU operands (f32 path) or bf16 softmax (v6e/v7x path).
    bf16_path = _use_bf16_softmax(_tpu_device_kind())
    tol = 2e-2 if bf16_path else 3e-3

    for scale in (1, 2):
        out = jax.block_until_ready(pyramid_self_attention(x, params, scale=scale))
        ref = _reference_forward(x, params, scale=scale)
        assert out.shape == (N, out_channels, H, W)
        assert bool(jnp.allclose(out, ref, atol=tol, rtol=tol)), \
            f"mismatch vs reference at scale={scale}"

    print("KERNEL_OK")
</pallas_src>

<mosaic_0001>
module attributes {stable_mosaic.version = 11 : i64} {
  func.func @_attention_kernel(%arg0: i32, %arg1: memref<4x256xf32, #tpu.memory_space<vmem>>, %arg2: memref<12x4xf32, #tpu.memory_space<vmem>>, %arg3: memref<12x1xf32, #tpu.memory_space<vmem>>, %arg4: memref<12x1xf32, #tpu.memory_space<vmem>>, %arg5: memref<1x4x256xf32, #tpu.memory_space<vmem>>, %arg6: memref<1x12x256xf32, #tpu.memory_space<vmem>>) attributes {dimension_semantics = [#tpu.dimension_semantics<parallel>], iteration_bounds = array<i64: 2>, scalar_prefetch = 0 : i64, scratch_operands = 1 : i64, tpu.core_type = #tpu.core_type<tc>, window_params = [{transform_indices = @transform_0, window_bounds = array<i64: 4, 256>}, {pipeline_mode = #tpu.pipeline_mode<synchronous>, transform_indices = @transform_1, window_bounds = array<i64: 12, 4>}, {pipeline_mode = #tpu.pipeline_mode<synchronous>, transform_indices = @transform_2, window_bounds = array<i64: 12, 1>}, {pipeline_mode = #tpu.pipeline_mode<synchronous>, transform_indices = @transform_3, window_bounds = array<i64: 12, 1>}, {transform_indices = @transform_4, window_bounds = array<i64: 1, 4, 256>}]} {
    %c0 = arith.constant 0 : index
    %c0_0 = arith.constant 0 : index
    %0 = vector.load %arg2[%c0, %c0_0] : memref<12x4xf32, #tpu.memory_space<vmem>>, vector<12x4xf32>
    %c0_1 = arith.constant 0 : index
    %c0_2 = arith.constant 0 : index
    %1 = vector.load %arg1[%c0_1, %c0_2] : memref<4x256xf32, #tpu.memory_space<vmem>>, vector<4x256xf32>
    %cst = arith.constant dense<0.000000e+00> : vector<12x256xf32>
    %2 = tpu.matmul %0, %1, %cst {dimension_numbers = #tpu.dot_dimension_numbers<[1], [0], [0], [1], [0, 0, 1, 1], [], []>} : vector<12x4xf32>, vector<4x256xf32>, vector<12x256xf32> -> vector<12x256xf32>
    %c0_3 = arith.constant 0 : index
    %c0_4 = arith.constant 0 : index
    %3 = vector.load %arg3[%c0_3, %c0_4] : memref<12x1xf32, #tpu.memory_space<vmem>>, vector<12x1xf32>
    %4 = vector.broadcast %3 : vector<12x1xf32> to vector<12x256xf32>
    %5 = arith.mulf %2, %4 : vector<12x256xf32>
    %c0_5 = arith.constant 0 : index
    %c0_6 = arith.constant 0 : index
    %6 = vector.load %arg4[%c0_5, %c0_6] : memref<12x1xf32, #tpu.memory_space<vmem>>, vector<12x1xf32>
    %7 = vector.broadcast %6 : vector<12x1xf32> to vector<12x256xf32>
    %8 = arith.addf %5, %7 : vector<12x256xf32>
    %9 = tpu.iota {dimensions = array<i32: 0>} : vector<12x256xi32>
    %c8_i32 = arith.constant 8 : i32
    %10 = vector.broadcast %c8_i32 : i32 to vector<12x256xi32>
    %11 = arith.cmpi slt, %9, %10 : vector<12x256xi32>
    %cst_7 = arith.constant 0.000000e+00 : f32
    %12 = vector.broadcast %cst_7 : f32 to vector<12x256xf32>
    %13 = arith.cmpf olt, %8, %12 : vector<12x256xf32>
    %14 = arith.andi %11, %13 : vector<12x256xi1>
    %cst_8 = arith.constant 0.00999999977 : f32
    %15 = vector.broadcast %cst_8 : f32 to vector<12x256xf32>
    %16 = arith.mulf %15, %8 : vector<12x256xf32>
    %17 = arith.select %14, %16, %8 : vector<12x256xi1>, vector<12x256xf32>
    %c0_9 = arith.constant 0 : index
    %c0_10 = arith.constant 0 : index
    %c0_11 = arith.constant 0 : index
    %18 = vector.load %arg6[%c0_9, %c0_10, %c0_11] : memref<1x12x256xf32, #tpu.memory_space<vmem>>, vector<1x12x256xf32>
    %19 = vector.shape_cast %18 : vector<1x12x256xf32> to vector<12x256xf32>
    %20 = vector.shape_cast %17 : vector<12x256xf32> to vector<1x12x256xf32>
    tpu.vector_store %arg6[%c0_9, %c0_10, %c0_11], %20 {strides = array<i32>} : memref<1x12x256xf32, #tpu.memory_space<vmem>>, vector<1x12x256xf32>,
    %c0_i32 = arith.constant 0 : i32
    %21 = arith.index_cast %c0_i32 : i32 to index
    %c0_12 = arith.constant 0 : index
    %c0_13 = arith.constant 0 : index
    %22 = vector.load %arg6[%21, %c0_12, %c0_13] : memref<1x12x256xf32, #tpu.memory_space<vmem>>, vector<1x12x256xf32>
    %23 = vector.shape_cast %22 : vector<1x12x256xf32> to vector<12x256xf32>
    %24 = vector.extract_strided_slice %23 {offsets = [0, 0], sizes = [8, 256], strides = [1, 1]} : vector<12x256xf32> to vector<8x256xf32>
    %25 = vector.extract_strided_slice %23 {offsets = [8, 0], sizes = [4, 256], strides = [1, 1]} : vector<12x256xf32> to vector<4x256xf32>
    %cst_14 = arith.constant dense<0.000000e+00> : vector<256x256xf32>
    %26 = tpu.matmul %24, %24, %cst_14 {dimension_numbers = #tpu.dot_dimension_numbers<[0], [0], [1], [1], [0, 1, 1, 1], [], []>} : vector<8x256xf32>, vector<8x256xf32>, vector<256x256xf32> -> vector<256x256xf32>
    %cst_15 = arith.constant dense<0xFF800000> : vector<256xf32>
    %27 = vector.multi_reduction <maximumf>, %26, %cst_15 [1] : vector<256x256xf32> to vector<256xf32>
    %28 = vector.shape_cast %27 : vector<256xf32> to vector<256x1xf32>
    %29 = vector.broadcast %28 : vector<256x1xf32> to vector<256x256xf32>
    %30 = arith.subf %26, %29 : vector<256x256xf32>
    %31 = math.exp %30 : vector<256x256xf32>
    %cst_16 = arith.constant dense<0.000000e+00> : vector<256xf32>
    %32 = vector.multi_reduction <add>, %31, %cst_16 [1] : vector<256x256xf32> to vector<256xf32>
    %33 = vector.shape_cast %32 : vector<256xf32> to vector<256x1xf32>
    %34 = tpu.reciprocal %33 {approx = true} : vector<256x1xf32> -> vector<256x1xf32>
    %35 = vector.broadcast %34 : vector<256x1xf32> to vector<256x256xf32>
    %36 = arith.mulf %31, %35 : vector<256x256xf32>
    %37 = arith.truncf %25 : vector<4x256xf32> to vector<4x256xbf16>
    %38 = arith.truncf %36 : vector<256x256xf32> to vector<256x256xbf16>
    %cst_17 = arith.constant dense<0.000000e+00> : vector<4x256xf32>
    %39 = tpu.matmul %37, %38, %cst_17 {dimension_numbers = #tpu.dot_dimension_numbers<[1], [1], [0], [0], [0, 0, 1, 0], [], []>} : vector<4x256xbf16>, vector<256x256xbf16>, vector<4x256xf32> -> vector<4x256xf32>
    %40 = arith.index_cast %c0_i32 : i32 to index
    %c0_18 = arith.constant 0 : index
    %c0_19 = arith.constant 0 : index
    %41 = vector.load %arg5[%40, %c0_18, %c0_19] : memref<1x4x256xf32, #tpu.memory_space<vmem>>, vector<1x4x256xf32>
    %42 = vector.shape_cast %41 : vector<1x4x256xf32> to vector<4x256xf32>
    %43 = vector.shape_cast %39 : vector<4x256xf32> to vector<1x4x256xf32>
    tpu.vector_store %arg5[%40, %c0_18, %c0_19], %43 {strides = array<i32>} : memref<1x4x256xf32, #tpu.memory_space<vmem>>, vector<1x4x256xf32>,
    %c1_i32 = arith.constant 1 : i32
    return
  }
  func.func @transform_0(%arg0: i32) -> (i32, i32) {
    %c0_i32 = arith.constant 0 : i32
    %c0_i32_0 = arith.constant 0 : i32
    return %c0_i32, %arg0 : i32, i32
  }
  func.func @transform_1(%arg0: i32) -> (i32, i32) {
    %c0_i32 = arith.constant 0 : i32
    %c0_i32_0 = arith.constant 0 : i32
    %c0_i32_1 = arith.constant 0 : i32
    return %c0_i32, %c0_i32_0 : i32, i32
  }
  func.func @transform_2(%arg0: i32) -> (i32, i32) {
    %c0_i32 = arith.constant 0 : i32
    %c0_i32_0 = arith.constant 0 : i32
    %c0_i32_1 = arith.constant 0 : i32
    return %c0_i32, %c0_i32_0 : i32, i32
  }
  func.func @transform_3(%arg0: i32) -> (i32, i32) {
    %c0_i32 = arith.constant 0 : i32
    %c0_i32_0 = arith.constant 0 : i32
    %c0_i32_1 = arith.constant 0 : i32
    return %c0_i32, %c0_i32_0 : i32, i32
  }
  func.func @transform_4(%arg0: i32) -> (i32, i32, i32) {
    %c0_i32 = arith.constant 0 : i32
    %c0_i32_0 = arith.constant 0 : i32
    %c0_i32_1 = arith.constant 0 : i32
    return %arg0, %c0_i32, %c0_i32_0 : i32, i32, i32
  }
}

</mosaic_0001>

<bundles_post_ra>
// kernel: tpu_custom_call.1
= control target key start
LH: loop header
LB: loop body
LE: loop exit
PB: predicated region body
PF: predicated region fallthrough
CT: control target
= control target key end

     0   :  { %9 = vsyncpa [#allocation4], 0  ;;  %s2494_s0 = inlined_call_operand.vmem [shape: f32[4,512], index: 0, kind: input, shape index: {}]   ;;  %s2495_s1 = inlined_call_operand.vmem [shape: f32[12,4], index: 1, kind: input, shape index: {}]   ;;  %s2496_s2 = inlined_call_operand.vmem [shape: f32[12,1], index: 2, kind: input, shape index: {}]   ;;  %s2497_s3 = inlined_call_operand.vmem [shape: f32[12,1], index: 3, kind: input, shape index: {}]   ;;  %s2498_s4 = inlined_call_operand.hbm [shape: f32[2,4,256], index: 4, kind: output, shape index: {}]  }
   0x1   :  { %11 = vsyncpa [#allocation4 + $0x1], 0  ;;  %s1782_s15 = smov 0   ;;  %s1784_s16 = smov 0  }
   0x2   :  { %s1786_s17 = smov 0   ;;  %s1788_s18 = smov 0  }
   0x3 LB: > { %s1803_s19 = sadd.s32 4294967295, %s1752_s18   ;;  %s1405_s20 = sadd.s32 4294967294, %s1752_s18   ;;  %s1752_s18 = sphi %s1788_s18, %s2588_s18   ;;  %s1748_s17 = sphi %s1786_s17, %s2587_s17   ;;  %s1744_s16 = sphi %s1784_s16, %s2586_s16   ;;  %s1740_s15 = sphi %s1782_s15, %s2585_s15  }
   0x4   : > { %s1807_s21 = sadd.s32 1, %s1752_s18   ;;  %s113_s22 = sadd.s32 1, %s1748_s17 }
   0x5   : > { %s110_s23 = ssub.s32 %s1752_s18, %s1807_s21  ;;  %p123_p0 = scmp.ne.s32.totalorder %s1748_s17, %s1744_s16 }
   0x6   : > { %p111_p1 = scmp.eq.s32.totalorder %s110_s23, 0  ;;  %p124_p2 = scmp.eq.s32.totalorder %s1803_s19, 1 }
   0x7   : > { %p129_p3 = scmp.ne.s32.totalorder %s1744_s16, %s1740_s15  ;;  %p130_p4 = scmp.eq.s32.totalorder %s1405_s20, 1 }
   0x8   : > { %s1818_s24 = scalar_select %p111_p1, %s1748_s17, %s113_s22  }
   0x9   : > { %p1820_p5 = por %p124_p2, %p123_p0  ;;  %p1824_p6 = por %p130_p4, %p129_p3 }
   0xa   : > { %p1408_p7 = scmp.ge.s32.totalorder %s1752_s18, 1  ;;  %p166_p8 = scmp.lt.s32.totalorder %s1752_s18, 3 }
   0xc   : > { %p167_p9 = pnand %p1408_p7, %p166_p8 }
   0xe   : > { %170 = sbr.rel (%p167_p9) target bundleno = 1341 (0x53d), region = 36 }
  0x15   : > { %s1410_s27 = sshll.u32 %s1803_s19, 1  ;;  %v1754_v0 = vmov 0.0   ;;  %v1755_v1 = vmov 0   ;;  %v292_v2 = vld [vmem:[%s2496_s2] sm:$0xff]  ;;  %vm210_vm0 = vcmask 1043456   ;;  %vm203_vm1 = vcmask 31744  }
  0x16   : > { %p193_p10 = scmp.lt.s32.totalorder %s1410_s27, 3  ;;  %279 = vmatprep.mubr.f32.mxu0 %v1754_v0  ;;  %1495 = vset.pattern.permute.xlu0 %v1755_v1  ;;  %v308_v3 = vld [vmem:[%s2497_s3] sm:$0xff]  ;;  %vm417_vm4 = vcmask 64512   ;;  %s1453_s29 = sshll.u32 %s1803_s19, 7 }
  0x17   : > { %296 = vperm.xlu0 %1495, %v292_v2   ;;  %578 = vmatprep.mubr.f32.mxu1 %v1754_v0  ;;  %v198_v6 = vld [vmem:[%s2495_s1] sm:$0xff]  ;;  %s2452_s8 = scalar_lea.hbm %s2498_s4, %s1453_s29  ;;  %s1756_s10 = smov [#allocation3]  }
  0x18   : > { %s2590_s27 = smov (!%p193_p10, %s1410_s27), 3  ;;  %s1694_s11 = sshll.u32 %s1756_s10, 4  ;;  %s1695_s11 = int_to_ptr.vmem [resolvable:$false] %s1694_s11 }
  0x19   : > { %s1411_s6 = sshll.u32 %s2590_s27, 2  ;;  %s189_s27 = sand.u32 1, %s1744_s16  }
  0x1a   : > { %s196_s9 = scalar_lea.vmem %s2494_s0, %s1411_s6  ;;  %s1409_s28 = sshll.u32 %s189_s27, 3 }
  0x1b   : > { %312 = vperm.xlu0 %1495, %v308_v3   ;;  %v200_v4 = vld [vmem:[%s196_s9] sm:$0xff]  ;;  %s191_s30 = scalar_lea.vmem [#allocation3], %s1409_s28  ;;  %s1332_s9 = scalar_lea.sflag [#allocation4], %s189_s27 }
  0x1c   : > { %v202_v5 = vcombine.high %v200_v4, %v200_v4  ;;  %s1346_s5 = sshll.u32 %s191_s30, 4  ;;  %s1696_s12 = scalar_lea.vmem %s1695_s11, 256  ;;  %s2454_s5 = int_to_ptr.vmem [resolvable:$true] %s1346_s5 }
  0x1d   : > { %s1690_s19 = scalar_lea.vmem %s2454_s5, 128  ;;  %p1697_p0 = scmp.lt.s32.totalorder %s2454_s5, %s1695_s11 }
  0x1e   : > { %1412 = vmatprep.subr.msk.mxu0 %vm210_vm0, %v202_v5  ;;  %p1691_p11 = scmp.ne.s32.totalorder %s2454_s5, %s1690_s19  ;;  %p1698_p1 = scmp.lt.s32.totalorder %s1696_s12, %s1690_s19 }
  0x1f   : > { %1413 = vmatpush1.msk.msra.mxu0 %vm210_vm0, %v200_v4 }
  0x20   : > { %1414 = vmatmul.mubr.msk.f32.vlgmr.msra.gmra.mrb[0].mxu0 %vm203_vm1, %v198_v6  ;;  %p1692_p12 = pnand %p1691_p11, %p1820_p5  ;;  %p1699_p2 = por %p1698_p1, %p1697_p0 }
  0x21   : > { %285 = vmatprep.mubr.f32.mxu0 %v1754_v0 }
  0x22   : > { %p1693_p13 = pneg %p1692_p12 }
  0x24   : > { %p1700_p3 = pnand %p1699_p2, %p1693_p13 }
  0x96   : > { %v297_v7 = vpop.permute.xlu0 %296 }
  0x9a   : > { %v313_v11 = vpop.permute.xlu0 %312 }
  0xf3   : > { %v281_v8 = vpop.f32.mrb[0].mxu0 }
  0xf4   : > { %v304_v9 = vmul.f32 %v297_v7, %v281_v8  ;;  %v283_v10 = vpop.f32.mrb[1].mxu0 }
  0xf5   : > { %v305_v12 = vmul.f32 %v297_v7, %v283_v10 }
  0xf6   : > { %v320_v13 = vadd.f32 %v313_v11, %v304_v9 }
  0xf7   : > { %v321_v14 = vadd.f32 %v313_v11, %v305_v12 }
  0xf8   : > { %vm329_vm2 = vcmp.lt.f32.partialorder %v320_v13, 0.0  ;;  %v337_v15 = vmul.f32 0.01, %v320_v13 }
  0xf9   : > { %vm330_vm3 = vcmp.lt.f32.partialorder %v321_v14, 0.0  ;;  %v338_v16 = vmul.f32 0.01, %v321_v14 }
  0xfa   : > { %v341_v17 = vsel %vm329_vm2, %v337_v15, %v320_v13 }
  0xfb   : > { %v342_v18 = vsel %vm330_vm3, %v338_v16, %v321_v14  ;;  %353 = vxpose.xlu1.b32.start.end [1/1] (short) %v341_v17, 128 }
  0xfc   : > { %514 = vmatprep.subr.mxu1 %v342_v18 }
  0xfd   : > { %515 = vmatpush1.msra.mxu1 %v341_v17 }
 0x138   : > { %385 = vxpose.xlu1.b32.start.end [1/1] (short) %v342_v18, 128 }
 0x156   : > { %1496 = vset.pattern.permute.xlu1 %v1755_v1 }
 0x17b   : > { %v369_v19 = vpop.trf.xlu1 }
 0x17c   : > { %1416 = vmatmul.mubr.msk.f32.vlgmr.msra.gmra.mrb[0].mxu1 %vm417_vm4, %v369_v19 }
 0x17d   : > { %584 = vmatprep.mubr.f32.mxu1 %v1754_v0 }
 0x17f   : > { %v370_v20 = vpop.trf.xlu1 }
 0x180   : > { %1417 = vmatmul.mubr.msk.f32.gmra.mrb[2].mxu1 %vm417_vm4, %v370_v20 }
 0x181   : > { %590 = vmatprep.mubr.f32.mxu1 %v1754_v0 }
 0x183   : > { %v371_v21 = vpop.trf.xlu1 }
 0x184   : > { %1418 = vmatmul.mubr.msk.f32.gmra.mrb[4].mxu1 %vm417_vm4, %v371_v21 }
 0x185   : > { %596 = vmatprep.mubr.f32.mxu1 %v1754_v0 }
 0x187   : > { %v372_v22 = vpop.trf.xlu1 }
 0x188   : > { %1419 = vmatmul.mubr.msk.f32.gmra.mrb[6].mxu1 %vm417_vm4, %v372_v22 }
 0x189   : > { %602 = vmatprep.mubr.f32.mxu1 %v1754_v0 }
 0x18b   : > { %v373_v23 = vpop.trf.xlu1 }
 0x18c   : > { %1420 = vmatmul.mubr.msk.f32.gmra.mrb[8].mxu1 %vm417_vm4, %v373_v23 }
 0x18d   : > { %608 = vmatprep.mubr.f32.mxu1 %v1754_v0 }
 0x18f   : > { %v374_v24 = vpop.trf.xlu1 }
 0x190   : > { %1421 = vmatmul.mubr.msk.f32.gmra.mrb[10].mxu1 %vm417_vm4, %v374_v24 }
 0x191   : > { %614 = vmatprep.mubr.f32.mxu1 %v1754_v0 }
 0x193   : > { %v375_v25 = vpop.trf.xlu1 }
 0x194   : > { %1422 = vmatmul.mubr.msk.f32.gmra.mrb[12].mxu1 %vm417_vm4, %v375_v25 }
 0x195   : > { %620 = vmatprep.mubr.f32.mxu1 %v1754_v0 }
 0x197   : > { %v376_v26 = vpop.trf.xlu1 }
 0x198   : > { %1423 = vmatmul.mubr.msk.f32.gmra.mrb[14].mxu1 %vm417_vm4, %v376_v26 }
 0x199   : > { %626 = vmatprep.mubr.f32.mxu1 %v1754_v0 }
 0x19b   : > { %v377_v27 = vpop.trf.xlu1 }
 0x19c   : > { %1424 = vmatmul.mubr.msk.f32.gmra.mrb[16].mxu1 %vm417_vm4, %v377_v27 }
 0x19d   : > { %632 = vmatprep.mubr.f32.mxu1 %v1754_v0 }
 0x19f   : > { %v378_v28 = vpop.trf.xlu1 }
 0x1a0   : > { %1425 = vmatmul.mubr.msk.f32.gmra.mrb[18].mxu1 %vm417_vm4, %v378_v28 }
 0x1a1   : > { %638 = vmatprep.mubr.f32.mxu1 %v1754_v0 }
 0x1a3   : > { %v379_v29 = vpop.trf.xlu1 }
 0x1a4   : > { %1426 = vmatmul.mubr.msk.f32.gmra.mrb[20].mxu1 %vm417_vm4, %v379_v29 }
 0x1a5   : > { %644 = vmatprep.mubr.f32.mxu1 %v1754_v0 }
 0x1a7   : > { %v380_v30 = vpop.trf.xlu1 }
 0x1a8   : > { %1427 = vmatmul.mubr.msk.f32.gmra.mrb[22].mxu1 %vm417_vm4, %v380_v30 }
 0x1a9   : > { %650 = vmatprep.mubr.f32.mxu1 %v1754_v0 }
 0x1ab   : > { %v381_v31 = vpop.trf.xlu1 }
 0x1ac   : > { %1428 = vmatmul.mubr.msk.f32.gmra.mrb[24].mxu1 %vm417_vm4, %v381_v31 }
 0x1ad   : > { %656 = vmatprep.mubr.f32.mxu1 %v1754_v0 }
 0x1af   : > { %v382_v32 = vpop.trf.xlu1 }
 0x1b0   : > { %1429 = vmatmul.mubr.msk.f32.gmra.mrb[26].mxu1 %vm417_vm4, %v382_v32 }
 0x1b1   : > { %662 = vmatprep.mubr.f32.mxu1 %v1754_v0 }
 0x1b3   : > { %v383_v33 = vpop.trf.xlu1 }
 0x1b4   : > { %1430 = vmatmul.mubr.msk.f32.gmra.mrb[28].mxu1 %vm417_vm4, %v383_v33 }
 0x1b5   : > { %668 = vmatprep.mubr.f32.mxu1 %v1754_v0 }
 0x1b7   : > { %v384_v34 = vpop.trf.xlu1 }
 0x1b8   : > { %1431 = vmatmul.mubr.msk.f32.gmra.mrb[30].mxu1 %vm417_vm4, %v384_v34 }
 0x1b9   : > { %674 = vmatprep.mubr.f32.mxu1 %v1754_v0 }
 0x1bb   : > { %v401_v35 = vpop.trf.xlu1 }
 0x1bc   : > { %1432 = vmatmul.mubr.msk.f32.gmra.mrb[32].mxu1 %vm417_vm4, %v401_v35 }
 0x1bd   : > { %680 = vmatprep.mubr.f32.mxu1 %v1754_v0 }
 0x1bf   : > { %v402_v36 = vpop.trf.xlu1 }
 0x1c0   : > { %1433 = vmatmul.mubr.msk.f32.gmra.mrb[34].mxu1 %vm417_vm4, %v402_v36 }
 0x1c1   : > { %686 = vmatprep.mubr.f32.mxu1 %v1754_v0 }
 0x1c3   : > { %v403_v37 = vpop.trf.xlu1 }
 0x1c4   : > { %1434 = vmatmul.mubr.msk.f32.gmra.mrb[36].mxu1 %vm417_vm4, %v403_v37 }
 0x1c5   : > { %692 = vmatprep.mubr.f32.mxu1 %v1754_v0 }
 0x1c7   : > { %v404_v38 = vpop.trf.xlu1 }
 0x1c8   : > { %1435 = vmatmul.mubr.msk.f32.gmra.mrb[38].mxu1 %vm417_vm4, %v404_v38 }
 0x1c9   : > { %698 = vmatprep.mubr.f32.mxu1 %v1754_v0 }
 0x1cb   : > { %v405_v39 = vpop.trf.xlu1 }
 0x1cc   : > { %1436 = vmatmul.mubr.msk.f32.gmra.mrb[40].mxu1 %vm417_vm4, %v405_v39 }
 0x1cd   : > { %704 = vmatprep.mubr.f32.mxu1 %v1754_v0 }
 0x1cf   : > { %v406_v40 = vpop.trf.xlu1 }
 0x1d0   : > { %1437 = vmatmul.mubr.msk.f32.gmra.mrb[42].mxu1 %vm417_vm4, %v406_v40 }
 0x1d1   : > { %710 = vmatprep.mubr.f32.mxu1 %v1754_v0 }
 0x1d3   : > { %v407_v41 = vpop.trf.xlu1 }
 0x1d4   : > { %1438 = vmatmul.mubr.msk.f32.gmra.mrb[44].mxu1 %vm417_vm4, %v407_v41 }
 0x1d5   : > { %716 = vmatprep.mubr.f32.mxu1 %v1754_v0 }
 0x1d7   : > { %v408_v42 = vpop.trf.xlu1 }
 0x1d8   : > { %1439 = vmatmul.mubr.msk.f32.gmra.mrb[46].mxu1 %vm417_vm4, %v408_v42 }
 0x1d9   : > { %722 = vmatprep.mubr.f32.mxu1 %v1754_v0 }
 0x1db   : > { %v409_v43 = vpop.trf.xlu1 }
 0x1dc   : > { %1440 = vmatmul.mubr.msk.f32.gmra.mrb[48].mxu1 %vm417_vm4, %v409_v43 }
 0x1dd   : > { %728 = vmatprep.mubr.f32.mxu1 %v1754_v0 }
 0x1df   : > { %v410_v44 = vpop.trf.xlu1 }
 0x1e0   : > { %1441 = vmatmul.mubr.msk.f32.gmra.mrb[50].mxu1 %vm417_vm4, %v410_v44 }
 0x1e1   : > { %734 = vmatprep.mubr.f32.mxu1 %v1754_v0 }
 0x1e3   : > { %v411_v45 = vpop.trf.xlu1 }
 0x1e4   : > { %1442 = vmatmul.mubr.msk.f32.gmra.mrb[52].mxu1 %vm417_vm4, %v411_v45 }
 0x1e5   : > { %740 = vmatprep.mubr.f32.mxu1 %v1754_v0 }
 0x1e7   : > { %v412_v46 = vpop.trf.xlu1 }
 0x1e8   : > { %1443 = vmatmul.mubr.msk.f32.gmra.mrb[54].mxu1 %vm417_vm4, %v412_v46 }
 0x1e9   : > { %746 = vmatprep.mubr.f32.mxu1 %v1754_v0 }
 0x1eb   : > { %v413_v47 = vpop.trf.xlu1 }
 0x1ec   : > { %1444 = vmatmul.mubr.msk.f32.gmra.mrb[56].mxu1 %vm417_vm4, %v413_v47 }
 0x1ed   : > { %752 = vmatprep.mubr.f32.mxu1 %v1754_v0 }
 0x1ef   : > { %v414_v48 = vpop.trf.xlu1 }
 0x1f0   : > { %1445 = vmatmul.mubr.msk.f32.gmra.mrb[58].mxu1 %vm417_vm4, %v414_v48 }
 0x1f1   : > { %758 = vmatprep.mubr.f32.mxu1 %v1754_v0 }
 0x1f3   : > { %v415_v49 = vpop.trf.xlu1 }
 0x1f4   : > { %1446 = vmatmul.mubr.msk.f32.gmra.mrb[60].mxu1 %vm417_vm4, %v415_v49 }
 0x1f5   : > { %764 = vmatprep.mubr.f32.mxu1 %v1754_v0 }
 0x1f7   : > { %v416_v50 = vpop.trf.xlu1 }
 0x1f8   : > { %1447 = vmatmul.mubr.msk.f32.gmra.mrb[62].mxu1 %vm417_vm4, %v416_v50 }
 0x24f   : > { %v1910_v51 = vpop.f32.mrb[0].mxu1 }
 0x250   : > { %v1912_v52 = vpop.f32.mrb[1].mxu1 }
 0x251   : > { %v771_v53 = vmax.f32 %v1910_v51, %v1912_v52 }
 0x253   : > { %772 = vmax.xlane.f32.xlu0 %v771_v53  ;;  %v1916_v54 = vpop.f32.mrb[2].mxu1 }
 0x254   : > { %v1918_v55 = vpop.f32.mrb[3].mxu1 }
 0x255   : > { %v774_v56 = vmax.f32 %v1916_v54, %v1918_v55 }
 0x257   : > { %775 = vmax.xlane.f32.xlu0 %v774_v56  ;;  %v1922_v57 = vpop.f32.mrb[4].mxu1 }
 0x258   : > { %v1924_v58 = vpop.f32.mrb[5].mxu1 }
 0x259   : > { %v777_v59 = vmax.f32 %v1922_v57, %v1924_v58 }
 0x25b   : > { %778 = vmax.xlane.f32.xlu0 %v777_v59  ;;  %v1928_v60 = vpop.f32.mrb[6].mxu1 }
 0x25c   : > { %v1930_v61 = vpop.f32.mrb[7].mxu1 }
 0x25d   : > { %v780_v62 = vmax.f32 %v1928_v60, %v1930_v61 }
 0x25f   : > { %781 = vmax.xlane.f32.xlu0 %v780_v62  ;;  %v1934_v63 = vpop.f32.mrb[8].mxu1 }
 0x260   : > { %v1936_v0 = vpop.f32.mrb[9].mxu1 }
 0x261   : > { %v783_v1 = vmax.f32 %v1934_v63, %v1936_v0 }
 0x263   : > { %784 = vmax.xlane.f32.xlu0 %v783_v1  ;;  %v1940_v2 = vpop.f32.mrb[10].mxu1 }
 0x264   : > { %v1942_v3 = vpop.f32.mrb[11].mxu1 }
 0x265   : > { %v786_v4 = vmax.f32 %v1940_v2, %v1942_v3 }
 0x267   : > { %787 = vmax.xlane.f32.xlu0 %v786_v4  ;;  %v1946_v5 = vpop.f32.mrb[12].mxu1 }
 0x268   : > { %v1948_v6 = vpop.f32.mrb[13].mxu1 }
 0x269   : > { %v789_v7 = vmax.f32 %v1946_v5, %v1948_v6 }
 0x26b   : > { %790 = vmax.xlane.f32.xlu0 %v789_v7  ;;  %v1952_v8 = vpop.f32.mrb[14].mxu1 }
 0x26c   : > { %v1954_v9 = vpop.f32.mrb[15].mxu1 }
 0x26d   : > { %v792_v10 = vmax.f32 %v1952_v8, %v1954_v9 }
 0x26f   : > { %793 = vmax.xlane.f32.xlu0 %v792_v10  ;;  %v1958_v11 = vpop.f32.mrb[16].mxu1 }
 0x270   : > { %v1960_v12 = vpop.f32.mrb[17].mxu1 }
 0x271   : > { %v795_v13 = vmax.f32 %v1958_v11, %v1960_v12 }
 0x273   : > { %796 = vmax.xlane.f32.xlu1 %v795_v13  ;;  %v1964_v14 = vpop.f32.mrb[18].mxu1 }
 0x274   : > { %v1966_v15 = vpop.f32.mrb[19].mxu1 }
 0x275   : > { %v798_v16 = vmax.f32 %v1964_v14, %v1966_v15 }
 0x277   : > { %799 = vmax.xlane.f32.xlu0 %v798_v16  ;;  %v1970_v17 = vpop.f32.mrb[20].mxu1 }
 0x278   : > { %v1972_v18 = vpop.f32.mrb[21].mxu1 }
 0x279   : > { %v801_v19 = vmax.f32 %v1970_v17, %v1972_v18 }
 0x27b   : > { %802 = vmax.xlane.f32.xlu0 %v801_v19  ;;  %v1976_v20 = vpop.f32.mrb[22].mxu1 }
 0x27c   : > { %v1978_v21 = vpop.f32.mrb[23].mxu1 }
 0x27d   : > { %v804_v22 = vmax.f32 %v1976_v20, %v1978_v21 }
 0x27f   : > { %805 = vmax.xlane.f32.xlu0 %v804_v22  ;;  %v1982_v23 = vpop.f32.mrb[24].mxu1 }
 0x280   : > { %v1984_v24 = vpop.f32.mrb[25].mxu1 }
 0x281   : > { %v807_v25 = vmax.f32 %v1982_v23, %v1984_v24 }
 0x283   : > { %808 = vmax.xlane.f32.xlu0 %v807_v25  ;;  %v1988_v26 = vpop.f32.mrb[26].mxu1 }
 0x284   : > { %v1990_v27 = vpop.f32.mrb[27].mxu1 }
 0x285   : > { %v810_v28 = vmax.f32 %v1988_v26, %v1990_v27 }
 0x287   : > { %811 = vmax.xlane.f32.xlu0 %v810_v28  ;;  %v1994_v29 = vpop.f32.mrb[28].mxu1 }
 0x288   : > { %v1996_v30 = vpop.f32.mrb[29].mxu1 }
 0x289   : > { %v813_v31 = vmax.f32 %v1994_v29, %v1996_v30 }
 0x28b   : > { %814 = vmax.xlane.f32.xlu0 %v813_v31  ;;  %v2000_v32 = vpop.f32.mrb[30].mxu1 }
 0x28c   : > { %v2002_v33 = vpop.f32.mrb[31].mxu1 }
 0x28d   : > { %v816_v34 = vmax.f32 %v2000_v32, %v2002_v33 }
 0x28f   : > { %817 = vmax.xlane.f32.xlu0 %v816_v34  ;;  %v2006_v35 = vpop.f32.mrb[32].mxu1 }
 0x290   : > { %v2008_v36 = vpop.f32.mrb[33].mxu1 }
 0x291   : > { %v819_v37 = vmax.f32 %v2006_v35, %v2008_v36 }
 0x293   : > { %820 = vmax.xlane.f32.xlu0 %v819_v37  ;;  %v2012_v38 = vpop.f32.mrb[34].mxu1 }
 0x294   : > { %v2014_v39 = vpop.f32.mrb[35].mxu1 }
 0x295   : > { %v822_v40 = vmax.f32 %v2012_v38, %v2014_v39 }
 0x297   : > { %823 = vmax.xlane.f32.xlu0 %v822_v40  ;;  %v2018_v41 = vpop.f32.mrb[36].mxu1 }
 0x298   : > { %v2020_v42 = vpop.f32.mrb[37].mxu1 }
 0x299   : > { %v825_v43 = vmax.f32 %v2018_v41, %v2020_v42 }
 0x29b   : > { %826 = vmax.xlane.f32.xlu0 %v825_v43  ;;  %v2024_v44 = vpop.f32.mrb[38].mxu1 }
 0x29c   : > { %v2026_v45 = vpop.f32.mrb[39].mxu1 }
 0x29d   : > { %v828_v46 = vmax.f32 %v2024_v44, %v2026_v45 }
 0x29f   : > { %829 = vmax.xlane.f32.xlu0 %v828_v46  ;;  %v2030_v47 = vpop.f32.mrb[40].mxu1 }
 0x2a0   : > { %v2032_v48 = vpop.f32.mrb[41].mxu1 }
 0x2a1   : > { %v831_v49 = vmax.f32 %v2030_v47, %v2032_v48 }
 0x2a3   : > { %832 = vmax.xlane.f32.xlu0 %v831_v49  ;;  %v2036_v50 = vpop.f32.mrb[42].mxu1 }
 0x2a4   : > { %v2038_v53 = vpop.f32.mrb[43].mxu1 }
 0x2a5   : > { %v834_v56 = vmax.f32 %v2036_v50, %v2038_v53 }
 0x2a7   : > { %835 = vmax.xlane.f32.xlu0 %v834_v56  ;;  %v2042_v59 = vpop.f32.mrb[44].mxu1 }
 0x2a8   : > { %v2044_v62 = vpop.f32.mrb[45].mxu1 }
 0x2a9   : > { %v837_v1 = vmax.f32 %v2042_v59, %v2044_v62 }
 0x2ab   : > { %838 = vmax.xlane.f32.xlu0 %v837_v1  ;;  %v2048_v4 = vpop.f32.mrb[46].mxu1 }
 0x2ac   : > { %2528 = vst [vmem:[#allocation6_spill] sm:$0xff] %v2048_v4  ;;  %v2050_v7 = vpop.f32.mrb[47].mxu1 }
 0x2ad   : > { %2529 = vst [vmem:[#allocation7_spill] sm:$0xff] %v2050_v7  ;;  %v840_v10 = vmax.f32 %v2048_v4, %v2050_v7 }
 0x2af   : > { %841 = vmax.xlane.f32.xlu0 %v840_v10  ;;  %v2054_v13 = vpop.f32.mrb[48].mxu1 }
 0x2b0   : > { %2530 = vst [vmem:[#allocation8_spill] sm:$0xff] %v2054_v13  ;;  %v2056_v16 = vpop.f32.mrb[49].mxu1 }
 0x2b1   : > { %2531 = vst [vmem:[#allocation9_spill] sm:$0xff] %v2056_v16  ;;  %v843_v19 = vmax.f32 %v2054_v13, %v2056_v16 }
 0x2b3   : > { %844 = vmax.xlane.f32.xlu0 %v843_v19  ;;  %v2060_v22 = vpop.f32.mrb[50].mxu1 }
 0x2b4   : > { %2532 = vst [vmem:[#allocation10_spill] sm:$0xff] %v2060_v22  ;;  %v2062_v25 = vpop.f32.mrb[51].mxu1 }
 0x2b5   : > { %2533 = vst [vmem:[#allocation11_spill] sm:$0xff] %v2062_v25  ;;  %v846_v28 = vmax.f32 %v2060_v22, %v2062_v25  ;;  %v199_v22 = vld [vmem:[%s2495_s1 + $0x8] sm:$0xf] }
 0x2b6   : > { %1415 = vmatmul.mubr.msk.f32.gmra.mrb[2].mxu0 %vm203_vm1, %v199_v22 }
 0x2b7   : > { %847 = vmax.xlane.f32.xlu0 %v846_v28  ;;  %v2066_v31 = vpop.f32.mrb[52].mxu1 }
 0x2b8   : > { %2534 = vst [vmem:[#allocation12_spill] sm:$0xff] %v2066_v31  ;;  %v2068_v34 = vpop.f32.mrb[53].mxu1 }
 0x2b9   : > { %2535 = vst [vmem:[#allocation13_spill] sm:$0xff] %v2068_v34  ;;  %v849_v37 = vmax.f32 %v2066_v31, %v2068_v34 }
 0x2bb   : > { %850 = vmax.xlane.f32.xlu0 %v849_v37  ;;  %v2072_v40 = vpop.f32.mrb[54].mxu1 }
 0x2bc   : > { %2536 = vst [vmem:[#allocation14_spill] sm:$0xff] %v2072_v40  ;;  %v2074_v43 = vpop.f32.mrb[55].mxu1 }
 0x2bd   : > { %2537 = vst [vmem:[#allocation15_spill] sm:$0xff] %v2074_v43  ;;  %v852_v46 = vmax.f32 %v2072_v40, %v2074_v43 }
 0x2bf   : > { %853 = vmax.xlane.f32.xlu0 %v852_v46  ;;  %v2078_v49 = vpop.f32.mrb[56].mxu1 }
 0x2c0   : > { %2538 = vst [vmem:[#allocation16_spill] sm:$0xff] %v2078_v49  ;;  %v2080_v56 = vpop.f32.mrb[57].mxu1 }
 0x2c1   : > { %2539 = vst [vmem:[#allocation17_spill] sm:$0xff] %v2080_v56  ;;  %v855_v1 = vmax.f32 %v2078_v49, %v2080_v56 }
 0x2c3   : > { %856 = vmax.xlane.f32.xlu1 %v855_v1  ;;  %v2084_v10 = vpop.f32.mrb[58].mxu1 }
 0x2c4   : > { %v2086_v19 = vpop.f32.mrb[59].mxu1 }
 0x2c7   : > { %v2090_v37 = vpop.f32.mrb[60].mxu1 }
 0x2c8   : > { %v2092_v34 = vpop.f32.mrb[61].mxu1 }
 0x2cb   : > { %v2096_v43 = vpop.f32.mrb[62].mxu1 }
 0x2cc   : > { %v2098_v40 = vpop.f32.mrb[63].mxu1 }
 0x2e0   : > { %v773_v56 = vpop.xlane.xlu0 %772 }
 0x2e1   : > { %v867_v49 = vsub.f32 %v1910_v51, %v773_v56  ;;  %v868_v31 = vsub.f32 %v1912_v52, %v773_v56 }
 0x2e3   : > { %v931_v28 = vmul.f32 1.442695, %v867_v49  ;;  %v933_v25 = vmul.f32 1.442695, %v868_v31 }
 0x2e4   : > { %v776_v16 = vpop.xlane.xlu0 %775 }
 0x2e5   : > { %1498 = vpow2.f32 %v931_v28  ;;  %v869_v46 = vsub.f32 %v1916_v54, %v776_v16  ;;  %v870_v13 = vsub.f32 %v1918_v55, %v776_v16 }
 0x2e6   : > { %1500 = vpow2.f32 %v933_v25 }
 0x2e7   : > { %v935_v1 = vmul.f32 1.442695, %v869_v46  ;;  %v937_v7 = vmul.f32 1.442695, %v870_v13 }
 0x2e8   : > { %v779_v51 = vpop.xlane.xlu0 %778 }
 0x2e9   : > { %1502 = vpow2.f32 %v935_v1  ;;  %v871_v52 = vsub.f32 %v1922_v57, %v779_v51  ;;  %v872_v31 = vsub.f32 %v1924_v58, %v779_v51 }
 0x2ea   : > { %1504 = vpow2.f32 %v937_v7 }
 0x2eb   : > { %v939_v49 = vmul.f32 1.442695, %v871_v52  ;;  %v941_v56 = vmul.f32 1.442695, %v872_v31 }
 0x2ec   : > { %v782_v4 = vpop.xlane.xlu0 %781 }
 0x2ed   : > { %1506 = vpow2.f32 %v939_v49  ;;  %v873_v22 = vsub.f32 %v1928_v60, %v782_v4  ;;  %v874_v54 = vsub.f32 %v1930_v61, %v782_v4 }
 0x2ee   : > { %1508 = vpow2.f32 %v941_v56 }
 0x2ef   : > { %v2114_v55 = vpop.eup %1498  ;;  %v943_v16 = vmul.f32 1.442695, %v873_v22  ;;  %v945_v13 = vmul.f32 1.442695, %v874_v54 }
 0x2f0   : > { %v2116_v25 = vpop.eup %1500  ;;  %v785_v28 = vpop.xlane.xlu0 %784 }
 0x2f1   : > { %1510 = vpow2.f32 %v943_v16  ;;  %v875_v57 = vsub.f32 %v1934_v63, %v785_v28  ;;  %v876_v58 = vsub.f32 %v1936_v0, %v785_v28  ;;  %v1059_v7 = vadd.f32 %v2116_v25, %v2114_v55 }
 0x2f2   : > { %1512 = vpow2.f32 %v945_v13 }
 0x2f3   : > { %v2122_v60 = vpop.eup %1502  ;;  %v947_v61 = vmul.f32 1.442695, %v875_v57  ;;  %v949_v4 = vmul.f32 1.442695, %v876_v58  ;;  %1060 = vadd.xlane.f32.xlu0 %v1059_v7 }
 0x2f4   : > { %v2124_v46 = vpop.eup %1504  ;;  %v788_v1 = vpop.xlane.xlu0 %787 }
 0x2f5   : > { %1514 = vpow2.f32 %v947_v61  ;;  %v877_v51 = vsub.f32 %v1940_v2, %v788_v1  ;;  %v878_v52 = vsub.f32 %v1942_v3, %v788_v1  ;;  %v1062_v63 = vadd.f32 %v2124_v46, %v2122_v60 }
 0x2f6   : > { %1516 = vpow2.f32 %v949_v4 }
 0x2f7   : > { %v2130_v0 = vpop.eup %1506  ;;  %v951_v31 = vmul.f32 1.442695, %v877_v51  ;;  %v953_v49 = vmul.f32 1.442695, %v878_v52  ;;  %1063 = vadd.xlane.f32.xlu0 %v1062_v63 }
 0x2f8   : > { %v2132_v56 = vpop.eup %1508  ;;  %v791_v22 = vpop.xlane.xlu0 %790 }
 0x2f9   : > { %1518 = vpow2.f32 %v951_v31  ;;  %v879_v54 = vsub.f32 %v1946_v5, %v791_v22  ;;  %v880_v16 = vsub.f32 %v1948_v6, %v791_v22  ;;  %v1065_v2 = vadd.f32 %v2132_v56, %v2130_v0 }
 0x2fa   : > { %1520 = vpow2.f32 %v953_v49 }
 0x2fb   : > { %v2138_v3 = vpop.eup %1510  ;;  %v955_v13 = vmul.f32 1.442695, %v879_v54  ;;  %v957_v28 = vmul.f32 1.442695, %v880_v16  ;;  %1066 = vadd.xlane.f32.xlu0 %v1065_v2 }
 0x2fc   : > { %v2140_v57 = vpop.eup %1512  ;;  %v794_v58 = vpop.xlane.xlu0 %793 }
 0x2fd   : > { %1522 = vpow2.f32 %v955_v13  ;;  %v881_v7 = vsub.f32 %v1952_v8, %v794_v58  ;;  %v882_v61 = vsub.f32 %v1954_v9, %v794_v58  ;;  %v1068_v5 = vadd.f32 %v2140_v57, %v2138_v3 }
 0x2fe   : > { %1524 = vpow2.f32 %v957_v28 }
 0x2ff   : > { %v2146_v6 = vpop.eup %1514  ;;  %v959_v4 = vmul.f32 1.442695, %v881_v7  ;;  %v961_v1 = vmul.f32 1.442695, %v882_v61  ;;  %1069 = vadd.xlane.f32.xlu0 %v1068_v5 }
 0x300   : > { %v2148_v51 = vpop.eup %1516  ;;  %v797_v52 = vpop.xlane.xlu1 %796 }
 0x301   : > { %1526 = vpow2.f32 %v959_v4  ;;  %v883_v63 = vsub.f32 %v1958_v11, %v797_v52  ;;  %v884_v31 = vsub.f32 %v1960_v12, %v797_v52  ;;  %v1071_v8 = vadd.f32 %v2148_v51, %v2146_v6 }
 0x302   : > { %1528 = vpow2.f32 %v961_v1 }
 0x303   : > { %v2154_v9 = vpop.eup %1518  ;;  %v963_v49 = vmul.f32 1.442695, %v883_v63  ;;  %v965_v22 = vmul.f32 1.442695, %v884_v31  ;;  %1072 = vadd.xlane.f32.xlu0 %v1071_v8  ;;  %v2540_v63 = vmax.f32 %v2084_v10, %v2086_v19 }
 0x304   : > { %v2156_v54 = vpop.eup %1520  ;;  %v800_v16 = vpop.xlane.xlu0 %799 }
 0x305   : > { %1530 = vpow2.f32 %v963_v49  ;;  %v885_v2 = vsub.f32 %v1964_v14, %v800_v16  ;;  %v886_v13 = vsub.f32 %v1966_v15, %v800_v16  ;;  %v1074_v11 = vadd.f32 %v2156_v54, %v2154_v9 }
 0x306   : > { %1532 = vpow2.f32 %v965_v22 }
 0x307   : > { %v2162_v12 = vpop.eup %1522  ;;  %v967_v28 = vmul.f32 1.442695, %v885_v2  ;;  %v969_v58 = vmul.f32 1.442695, %v886_v13  ;;  %1075 = vadd.xlane.f32.xlu0 %v1074_v11  ;;  %v2541_v13 = vmax.f32 %v2090_v37, %v2092_v34 }
 0x308   : > { %v2164_v7 = vpop.eup %1524  ;;  %v803_v61 = vpop.xlane.xlu0 %802 }
 0x309   : > { %1534 = vpow2.f32 %v967_v28  ;;  %v887_v5 = vsub.f32 %v1970_v17, %v803_v61  ;;  %v888_v4 = vsub.f32 %v1972_v18, %v803_v61  ;;  %v1077_v14 = vadd.f32 %v2164_v7, %v2162_v12 }
 0x30a   : > { %1536 = vpow2.f32 %v969_v58 }
 0x30b   : > { %v2170_v15 = vpop.eup %1526  ;;  %v971_v1 = vmul.f32 1.442695, %v887_v5  ;;  %v973_v52 = vmul.f32 1.442695, %v888_v4  ;;  %1078 = vadd.xlane.f32.xlu1 %v1077_v14  ;;  %859 = vmax.xlane.f32.xlu0 %v2540_v63  ;;  %v2542_v14 = vmax.f32 %v2096_v43, %v2098_v40 }
 0x30c   : > { %v2175_v31 = vpop.eup %1528  ;;  %v806_v8 = vpop.xlane.xlu0 %805 }
 0x30d   : > { %1538 = vpow2.f32 %v971_v1  ;;  %v889_v17 = vsub.f32 %v1976_v20, %v806_v8  ;;  %v890_v18 = vsub.f32 %v1978_v21, %v806_v8  ;;  %v1080_v49 = vadd.f32 %v2175_v31, %v2170_v15 }
 0x30e   : > { %1540 = vpow2.f32 %v973_v52 }
 0x30f   : > { %v2181_v22 = vpop.eup %1530  ;;  %v975_v16 = vmul.f32 1.442695, %v889_v17  ;;  %v977_v2 = vmul.f32 1.442695, %v890_v18  ;;  %1081 = vadd.xlane.f32.xlu0 %v1080_v49  ;;  %862 = vmax.xlane.f32.xlu1 %v2541_v13 }
 0x310   : > { %v2186_v11 = vpop.eup %1532  ;;  %v809_v28 = vpop.xlane.xlu0 %808 }
 0x311   : > { %1542 = vpow2.f32 %v975_v16  ;;  %v891_v20 = vsub.f32 %v1982_v23, %v809_v28  ;;  %v892_v21 = vsub.f32 %v1984_v24, %v809_v28  ;;  %v1083_v58 = vadd.f32 %v2186_v11, %v2181_v22 }
 0x312   : > { %1544 = vpow2.f32 %v977_v2 }
 0x313   : > { %v2192_v61 = vpop.eup %1534  ;;  %v979_v5 = vmul.f32 1.442695, %v891_v20  ;;  %v981_v4 = vmul.f32 1.442695, %v892_v21  ;;  %1084 = vadd.xlane.f32.xlu1 %v1083_v58  ;;  %865 = vmax.xlane.f32.xlu0 %v2542_v14 }
 0x314   : > { %v2197_v1 = vpop.eup %1536  ;;  %v812_v52 = vpop.xlane.xlu0 %811 }
 0x315   : > { %1546 = vpow2.f32 %v979_v5  ;;  %v893_v23 = vsub.f32 %v1988_v26, %v812_v52  ;;  %v894_v24 = vsub.f32 %v1990_v27, %v812_v52  ;;  %v1086_v63 = vadd.f32 %v2197_v1, %v2192_v61 }
 0x316   : > { %1548 = vpow2.f32 %v981_v4 }
 0x317   : > { %v2203_v8 = vpop.eup %1538  ;;  %v983_v17 = vmul.f32 1.442695, %v893_v23  ;;  %v985_v18 = vmul.f32 1.442695, %v894_v24  ;;  %1087 = vadd.xlane.f32.xlu0 %v1086_v63 }
 0x318   : > { %v2205_v49 = vpop.eup %1540  ;;  %v815_v16 = vpop.xlane.xlu0 %814 }
 0x319   : > { %1550 = vpow2.f32 %v983_v17  ;;  %v895_v2 = vsub.f32 %v1994_v29, %v815_v16  ;;  %v896_v13 = vsub.f32 %v1996_v30, %v815_v16  ;;  %v1089_v26 = vadd.f32 %v2205_v49, %v2203_v8 }
 0x31a   : > { %1552 = vpow2.f32 %v985_v18 }
 0x31b   : > { %v2211_v27 = vpop.eup %1542  ;;  %v987_v28 = vmul.f32 1.442695, %v895_v2  ;;  %v989_v20 = vmul.f32 1.442695, %v896_v13  ;;  %1090 = vadd.xlane.f32.xlu1 %v1089_v26 }
 0x31c   : > { %v2213_v21 = vpop.eup %1544  ;;  %v818_v58 = vpop.xlane.xlu0 %817 }
 0x31d   : > { %1554 = vpow2.f32 %v987_v28  ;;  %v897_v5 = vsub.f32 %v2000_v32, %v818_v58  ;;  %v898_v4 = vsub.f32 %v2002_v33, %v818_v58  ;;  %v1092_v29 = vadd.f32 %v2213_v21, %v2211_v27 }
 0x31e   : > { %1556 = vpow2.f32 %v989_v20 }
 0x31f   : > { %v2219_v30 = vpop.eup %1546  ;;  %v991_v14 = vmul.f32 1.442695, %v897_v5  ;;  %v993_v52 = vmul.f32 1.442695, %v898_v4  ;;  %1093 = vadd.xlane.f32.xlu0 %v1092_v29 }
 0x320   : > { %v2221_v23 = vpop.eup %1548  ;;  %v821_v24 = vpop.xlane.xlu0 %820 }
 0x321   : > { %1558 = vpow2.f32 %v991_v14  ;;  %v899_v63 = vsub.f32 %v2006_v35, %v821_v24  ;;  %v900_v17 = vsub.f32 %v2008_v36, %v821_v24  ;;  %v1095_v32 = vadd.f32 %v2221_v23, %v2219_v30 }
 0x322   : > { %1560 = vpow2.f32 %v993_v52 }
 0x323   : > { %v2227_v33 = vpop.eup %1550  ;;  %v995_v18 = vmul.f32 1.442695, %v899_v63  ;;  %v997_v16 = vmul.f32 1.442695, %v900_v17  ;;  %1096 = vadd.xlane.f32.xlu1 %v1095_v32 }
 0x324   : > { %v2229_v2 = vpop.eup %1552  ;;  %v824_v13 = vpop.xlane.xlu0 %823 }
 0x325   : > { %1562 = vpow2.f32 %v995_v18  ;;  %v901_v26 = vsub.f32 %v2012_v38, %v824_v13  ;;  %v902_v28 = vsub.f32 %v2014_v39, %v824_v13  ;;  %v1098_v35 = vadd.f32 %v2229_v2, %v2227_v33 }
 0x326   : > { %1564 = vpow2.f32 %v997_v16 }
 0x327   : > { %v2235_v36 = vpop.eup %1554  ;;  %v999_v20 = vmul.f32 1.442695, %v901_v26  ;;  %v1001_v58 = vmul.f32 1.442695, %v902_v28  ;;  %1099 = vadd.xlane.f32.xlu0 %v1098_v35 }
 0x328   : > { %v2237_v5 = vpop.eup %1556  ;;  %v827_v4 = vpop.xlane.xlu0 %826 }
 0x329   : > { %1566 = vpow2.f32 %v999_v20  ;;  %v903_v29 = vsub.f32 %v2018_v41, %v827_v4  ;;  %v904_v14 = vsub.f32 %v2020_v42, %v827_v4  ;;  %v1101_v38 = vadd.f32 %v2237_v5, %v2235_v36 }
 0x32a   : > { %1568 = vpow2.f32 %v1001_v58 }
 0x32b   : > { %v2243_v39 = vpop.eup %1558  ;;  %v1003_v52 = vmul.f32 1.442695, %v903_v29  ;;  %v1005_v24 = vmul.f32 1.442695, %v904_v14  ;;  %1102 = vadd.xlane.f32.xlu1 %v1101_v38 }
 0x32c   : > { %v2245_v63 = vpop.eup %1560  ;;  %v830_v17 = vpop.xlane.xlu0 %829 }
 0x32d   : > { %1570 = vpow2.f32 %v1003_v52  ;;  %v905_v32 = vsub.f32 %v2024_v44, %v830_v17  ;;  %v906_v18 = vsub.f32 %v2026_v45, %v830_v17  ;;  %v1104_v41 = vadd.f32 %v2245_v63, %v2243_v39 }
 0x32e   : > { %1572 = vpow2.f32 %v1005_v24 }
 0x32f   : > { %v2251_v42 = vpop.eup %1562  ;;  %v1007_v16 = vmul.f32 1.442695, %v905_v32  ;;  %v1009_v13 = vmul.f32 1.442695, %v906_v18  ;;  %1105 = vadd.xlane.f32.xlu0 %v1104_v41 }
 0x330   : > { %v2253_v26 = vpop.eup %1564  ;;  %v833_v28 = vpop.xlane.xlu0 %832 }
 0x331   : > { %1574 = vpow2.f32 %v1007_v16  ;;  %v907_v35 = vsub.f32 %v2030_v47, %v833_v28  ;;  %v908_v20 = vsub.f32 %v2032_v48, %v833_v28  ;;  %v1107_v44 = vadd.f32 %v2253_v26, %v2251_v42 }
 0x332   : > { %1576 = vpow2.f32 %v1009_v13 }
 0x333   : > { %v2259_v45 = vpop.eup %1566  ;;  %v1011_v58 = vmul.f32 1.442695, %v907_v35  ;;  %v1013_v4 = vmul.f32 1.442695, %v908_v20  ;;  %1108 = vadd.xlane.f32.xlu1 %v1107_v44  ;;  %v2543_v44 = vld [vmem:[#allocation6_spill] sm:$0xff] }
 0x334   : > { %v2261_v29 = vpop.eup %1568  ;;  %v836_v14 = vpop.xlane.xlu0 %835 }
 0x335   : > { %1578 = vpow2.f32 %v1011_v58  ;;  %v909_v38 = vsub.f32 %v2036_v50, %v836_v14  ;;  %v910_v52 = vsub.f32 %v2038_v53, %v836_v14  ;;  %v1110_v47 = vadd.f32 %v2261_v29, %v2259_v45 }
 0x336   : > { %1580 = vpow2.f32 %v1013_v4  ;;  %v2544_v4 = vld [vmem:[#allocation7_spill] sm:$0xff] }
 0x337   : > { %v2267_v48 = vpop.eup %1570  ;;  %v1015_v24 = vmul.f32 1.442695, %v909_v38  ;;  %v1017_v17 = vmul.f32 1.442695, %v910_v52  ;;  %1111 = vadd.xlane.f32.xlu0 %v1110_v47 }
 0x338   : > { %v2269_v32 = vpop.eup %1572  ;;  %v839_v18 = vpop.xlane.xlu0 %838 }
 0x339   : > { %1582 = vpow2.f32 %v1015_v24  ;;  %v911_v41 = vsub.f32 %v2042_v59, %v839_v18  ;;  %v912_v16 = vsub.f32 %v2044_v62, %v839_v18  ;;  %v1113_v50 = vadd.f32 %v2269_v32, %v2267_v48 }
 0x33a   : > { %1584 = vpow2.f32 %v1017_v17  ;;  %v2547_v17 = vld [vmem:[#allocation8_spill] sm:$0xff] }
 0x33b   : > { %v2275_v53 = vpop.eup %1574  ;;  %v1019_v13 = vmul.f32 1.442695, %v911_v41  ;;  %v1021_v28 = vmul.f32 1.442695, %v912_v16  ;;  %1114 = vadd.xlane.f32.xlu1 %v1113_v50  ;;  %v2548_v41 = vld [vmem:[#allocation9_spill] sm:$0xff] }
 0x33c   : > { %v2277_v35 = vpop.eup %1576  ;;  %v842_v20 = vpop.xlane.xlu0 %841 }
 0x33d   : > { %1586 = vpow2.f32 %v1019_v13  ;;  %v913_v58 = vsub.f32 %v2543_v44, %v842_v20  ;;  %v914_v14 = vsub.f32 %v2544_v4, %v842_v20  ;;  %v1116_v59 = vadd.f32 %v2277_v35, %v2275_v53  ;;  %v2551_v4 = vld [vmem:[#allocation10_spill] sm:$0xff] }
 0x33e   : > { %1588 = vpow2.f32 %v1021_v28 }
 0x33f   : > { %v2283_v62 = vpop.eup %1578  ;;  %v1023_v38 = vmul.f32 1.442695, %v913_v58  ;;  %v1025_v52 = vmul.f32 1.442695, %v914_v14  ;;  %1117 = vadd.xlane.f32.xlu0 %v1116_v59  ;;  %v2552_v59 = vld [vmem:[#allocation11_spill] sm:$0xff] }
 0x340   : > { %2545 = vst [vmem:[#allocation6_spill] sm:$0xff] %v2283_v62  ;;  %v2285_v47 = vpop.eup %1580  ;;  %v845_v24 = vpop.xlane.xlu0 %844 }
 0x341   : > { %2546 = vst [vmem:[#allocation7_spill] sm:$0xff] %v2285_v47  ;;  %1590 = vpow2.f32 %v1023_v38  ;;  %v915_v18 = vsub.f32 %v2547_v17, %v845_v24  ;;  %v916_v16 = vsub.f32 %v2548_v41, %v845_v24  ;;  %v1119_v50 = vadd.f32 %v2285_v47, %v2283_v62 }
 0x342   : > { %1592 = vpow2.f32 %v1025_v52 }
 0x343   : > { %v2291_v13 = vpop.eup %1582  ;;  %v1027_v28 = vmul.f32 1.442695, %v915_v18  ;;  %v1029_v20 = vmul.f32 1.442695, %v916_v16  ;;  %1120 = vadd.xlane.f32.xlu1 %v1119_v50  ;;  %v2555_v50 = vld [vmem:[#allocation12_spill] sm:$0xff] }
 0x344   : > { %2549 = vst [vmem:[#allocation8_spill] sm:$0xff] %v2291_v13  ;;  %v2293_v44 = vpop.eup %1584  ;;  %v848_v58 = vpop.xlane.xlu0 %847 }
 0x345   : > { %2550 = vst [vmem:[#allocation9_spill] sm:$0xff] %v2293_v44  ;;  %1594 = vpow2.f32 %v1027_v28  ;;  %v917_v14 = vsub.f32 %v2551_v4, %v848_v58  ;;  %v918_v38 = vsub.f32 %v2552_v59, %v848_v58  ;;  %v1122_v24 = vadd.f32 %v2293_v44, %v2291_v13  ;;  %v2556_v28 = vld [vmem:[#allocation13_spill] sm:$0xff] }
 0x346   : > { %1596 = vpow2.f32 %v1029_v20 }
 0x347   : > { %v2299_v17 = vpop.eup %1586  ;;  %v1031_v52 = vmul.f32 1.442695, %v917_v14  ;;  %v1033_v41 = vmul.f32 1.442695, %v918_v38  ;;  %1123 = vadd.xlane.f32.xlu0 %v1122_v24  ;;  %v2557_v24 = vld [vmem:[#allocation14_spill] sm:$0xff] }
 0x348   : > { %2553 = vst [vmem:[#allocation10_spill] sm:$0xff] %v2299_v17  ;;  %v2301_v18 = vpop.eup %1588  ;;  %v851_v16 = vpop.xlane.xlu0 %850 }
 0x349   : > { %2554 = vst [vmem:[#allocation11_spill] sm:$0xff] %v2301_v18  ;;  %1598 = vpow2.f32 %v1031_v52  ;;  %v919_v62 = vsub.f32 %v2555_v50, %v851_v16  ;;  %v920_v47 = vsub.f32 %v2556_v28, %v851_v16  ;;  %v1125_v58 = vadd.f32 %v2301_v18, %v2299_v17  ;;  %v2558_v52 = vld [vmem:[#allocation15_spill] sm:$0xff] }
 0x34a   : > { %1600 = vpow2.f32 %v1033_v41 }
 0x34b   : > { %v2307_v4 = vpop.eup %1590  ;;  %v1035_v20 = vmul.f32 1.442695, %v919_v62  ;;  %v1037_v59 = vmul.f32 1.442695, %v920_v47  ;;  %1126 = vadd.xlane.f32.xlu1 %v1125_v58  ;;  %v2560_v58 = vld [vmem:[#allocation16_spill] sm:$0xff] }
 0x34c   : > { %v2309_v14 = vpop.eup %1592  ;;  %v854_v38 = vpop.xlane.xlu0 %853 }
 0x34d   : > { %1602 = vpow2.f32 %v1035_v20  ;;  %v921_v13 = vsub.f32 %v2557_v24, %v854_v38  ;;  %v922_v44 = vsub.f32 %v2558_v52, %v854_v38  ;;  %v1128_v16 = vadd.f32 %v2309_v14, %v2307_v4  ;;  %v2561_v20 = vld [vmem:[#allocation17_spill] sm:$0xff] }
 0x34e   : > { %1604 = vpow2.f32 %v1037_v59 }
 0x34f   : > { %v2315_v50 = vpop.eup %1594  ;;  %v1039_v41 = vmul.f32 1.442695, %v921_v13  ;;  %v1041_v28 = vmul.f32 1.442695, %v922_v44  ;;  %1129 = vadd.xlane.f32.xlu0 %v1128_v16 }
 0x350   : > { %2559 = vst [vmem:[#allocation12_spill] sm:$0xff] %v2315_v50  ;;  %v2317_v62 = vpop.eup %1596  ;;  %v857_v47 = vpop.xlane.xlu1 %856 }
 0x351   : > { %1606 = vpow2.f32 %v1039_v41  ;;  %v923_v17 = vsub.f32 %v2560_v58, %v857_v47  ;;  %v924_v18 = vsub.f32 %v2561_v20, %v857_v47  ;;  %v1131_v38 = vadd.f32 %v2317_v62, %v2315_v50 }
 0x352   : > { %1608 = vpow2.f32 %v1041_v28 }
 0x353   : > { %v2323_v24 = vpop.eup %1598  ;;  %v1043_v59 = vmul.f32 1.442695, %v923_v17  ;;  %v1045_v52 = vmul.f32 1.442695, %v924_v18  ;;  %1132 = vadd.xlane.f32.xlu1 %v1131_v38 }
 0x354   : > { %2562 = vst [vmem:[#allocation13_spill] sm:$0xff] %v2323_v24  ;;  %v2325_v13 = vpop.eup %1600 }
 0x355   : > { %2563 = vst [vmem:[#allocation14_spill] sm:$0xff] %v2325_v13  ;;  %1610 = vpow2.f32 %v1043_v59  ;;  %v1134_v44 = vadd.f32 %v2325_v13, %v2323_v24 }
 0x356   : > { %1612 = vpow2.f32 %v1045_v52 }
 0x357   : > { %v2329_v16 = vpop.eup %1602  ;;  %1135 = vadd.xlane.f32.xlu0 %v1134_v44 }
 0x358   : > { %2564 = vst [vmem:[#allocation15_spill] sm:$0xff] %v2329_v16  ;;  %v2331_v41 = vpop.eup %1604 }
 0x359   : > { %2565 = vst [vmem:[#allocation16_spill] sm:$0xff] %v2331_v41  ;;  %v1137_v28 = vadd.f32 %v2331_v41, %v2329_v16 }
 0x35b   : > { %v2335_v47 = vpop.eup %1606  ;;  %1138 = vadd.xlane.f32.xlu1 %v1137_v28 }
 0x35c   : > { %2566 = vst [vmem:[#allocation17_spill] sm:$0xff] %v2335_v47  ;;  %v2337_v17 = vpop.eup %1608 }
 0x35d   : > { %2567 = vst [vmem:[#allocation18_spill] sm:$0xff] %v2337_v17  ;;  %v1140_v18 = vadd.f32 %v2337_v17, %v2335_v47 }
 0x35f   : > { %v2341_v58 = vpop.eup %1610  ;;  %1141 = vadd.xlane.f32.xlu0 %v1140_v18 }
 0x360   : > { %2568 = vst [vmem:[#allocation19_spill] sm:$0xff] %v2341_v58  ;;  %v2343_v20 = vpop.eup %1612 }
 0x361   : > { %2569 = vst [vmem:[#allocation20_spill] sm:$0xff] %v2343_v20  ;;  %v1143_v38 = vadd.f32 %v2343_v20, %v2341_v58 }
 0x363   : > { %1144 = vadd.xlane.f32.xlu1 %v1143_v38 }
 0x380   : > { %v1061_v59 = vpop.xlane.xlu0 %1060 }
 0x381   : > { %1614 = vrcp.f32 %v1061_v59 }
 0x384   : > { %v1064_v52 = vpop.xlane.xlu0 %1063 }
 0x385   : > { %1616 = vrcp.f32 %v1064_v52 }
 0x388   : > { %v1067_v44 = vpop.xlane.xlu0 %1066 }
 0x389   : > { %1618 = vrcp.f32 %v1067_v44 }
 0x38b   : > { %v1615_v16 = vpop.eup %1614 }
 0x38c   : > { %v1070_v28 = vpop.xlane.xlu0 %1069  ;;  %v1188_v17 = vmul.f32 %v1615_v16, %v2116_v25  ;;  %v1187_v50 = vmul.f32 %v1615_v16, %v2114_v55 }
 0x38d   : > { %1620 = vrcp.f32 %v1070_v28 }
 0x38f   : > { %v1617_v41 = vpop.eup %1616 }
 0x390   : > { %v1073_v47 = vpop.xlane.xlu0 %1072  ;;  %v1190_v18 = vmul.f32 %v1617_v41, %v2124_v46  ;;  %v1189_v58 = vmul.f32 %v1617_v41, %v2122_v60 }
 0x391   : > { %1622 = vrcp.f32 %v1073_v47 }
 0x392   : > { %v1254_v38 = vpack.c.bf16 %v1190_v18, %v1188_v17  ;;  %v1253_v20 = vpack.c.bf16 %v1189_v58, %v1187_v50 }
 0x393   : > { %v1619_v52 = vpop.eup %1618 }
 0x394   : > { %1285 = vmatprep.subr.bf16.mxu0 %v1254_v38  ;;  %v1076_v59 = vpop.xlane.xlu0 %1075  ;;  %v1192_v13 = vmul.f32 %v1619_v52, %v2132_v56  ;;  %v1191_v46 = vmul.f32 %v1619_v52, %v2130_v0 }
 0x395   : > { %1624 = vrcp.f32 %v1076_v59  ;;  %1286 = vmatpush1.bf16.xpose.msra.mxu0 %v1253_v20 }
 0x397   : > { %v1621_v44 = vpop.eup %1620 }
 0x398   : > { %v1079_v28 = vpop.xlane.xlu1 %1078  ;;  %v860_v24 = vpop.xlane.xlu0 %859  ;;  %v1194_v25 = vmul.f32 %v1621_v44, %v2140_v57  ;;  %v1193_v55 = vmul.f32 %v1621_v44, %v2138_v3 }
 0x399   : > { %v925_v60 = vsub.f32 %v2084_v10, %v860_v24  ;;  %v926_v50 = vsub.f32 %v2086_v19, %v860_v24  ;;  %1626 = vrcp.f32 %v1079_v28 }
 0x39a   : > { %v1256_v16 = vpack.c.bf16 %v1194_v25, %v1192_v13  ;;  %v1255_v41 = vpack.c.bf16 %v1193_v55, %v1191_v46 }
 0x39b   : > { %v1047_v47 = vmul.f32 1.442695, %v925_v60  ;;  %v1049_v17 = vmul.f32 1.442695, %v926_v50  ;;  %v1623_v18 = vpop.eup %1622 }
 0x39c   : > { %1287 = vmatprep.subr.bf16.mxu0 %v1256_v16  ;;  %v1082_v58 = vpop.xlane.xlu0 %1081  ;;  %v863_v20 = vpop.xlane.xlu1 %862  ;;  %v1196_v24 = vmul.f32 %v1623_v18, %v2148_v51  ;;  %v1195_v38 = vmul.f32 %v1623_v18, %v2146_v6 }
 0x39d   : > { %1628 = vpow2.f32 %v1047_v47  ;;  %v927_v56 = vsub.f32 %v2090_v37, %v863_v20  ;;  %v928_v0 = vsub.f32 %v2092_v34, %v863_v20  ;;  %1288 = vmatpush1.bf16.xpose.msra.mxu0 %v1255_v41 }
 0x39e   : > { %1630 = vpow2.f32 %v1049_v17 }
 0x39f   : > { %v1625_v3 = vpop.eup %1624  ;;  %1632 = vrcp.f32 %v1082_v58  ;;  %v1051_v10 = vmul.f32 1.442695, %v927_v56  ;;  %v1053_v19 = vmul.f32 1.442695, %v928_v0 }
 0x3a0   : > { %v866_v57 = vpop.xlane.xlu0 %865  ;;  %v1198_v13 = vmul.f32 %v1625_v3, %v2156_v54  ;;  %v1197_v59 = vmul.f32 %v1625_v3, %v2154_v9  ;;  %v1085_v52 = vpop.xlane.xlu1 %1084 }
 0x3a1   : > { %1634 = vpow2.f32 %v1051_v10  ;;  %v929_v37 = vsub.f32 %v2096_v43, %v866_v57  ;;  %v930_v34 = vsub.f32 %v2098_v40, %v866_v57 }
 0x3a2   : > { %1636 = vpow2.f32 %v1053_v19  ;;  %v1258_v44 = vpack.c.bf16 %v1198_v13, %v1196_v24  ;;  %v1257_v28 = vpack.c.bf16 %v1197_v59, %v1195_v38 }
 0x3a3   : > { %v1055_v25 = vmul.f32 1.442695, %v929_v37  ;;  %v1057_v46 = vmul.f32 1.442695, %v930_v34  ;;  %1638 = vrcp.f32 %v1085_v52  ;;  %v1627_v54 = vpop.eup %1626 }
 0x3a4   : > { %1289 = vmatprep.subr.bf16.mxu0 %v1258_v44  ;;  %v1088_v51 = vpop.xlane.xlu0 %1087  ;;  %v1200_v60 = vmul.f32 %v1627_v54, %v2164_v7  ;;  %v1199_v16 = vmul.f32 %v1627_v54, %v2162_v12 }
 0x3a5   : > { %1640 = vpow2.f32 %v1055_v25  ;;  %1290 = vmatpush1.bf16.xpose.msra.mxu0 %v1257_v28 }
 0x3a6   : > { %1642 = vpow2.f32 %v1057_v46 }
 0x3a7   : > { %v2365_v6 = vpop.eup %1628  ;;  %1644 = vrcp.f32 %v1088_v51  ;;  %v293_v51 = vld [vmem:[%s2496_s2 + $0x8] sm:$0xf] }
 0x3a8   : > { %v2367_v9 = vpop.eup %1630  ;;  %v1091_v43 = vpop.xlane.xlu1 %1090 }
 0x3a9   : > { %v1633_v55 = vpop.eup %1632  ;;  %v1146_v40 = vadd.f32 %v2367_v9, %v2365_v6  ;;  %1646 = vrcp.f32 %v1091_v43 }
 0x3aa   : > { %v1202_v50 = vmul.f32 %v1633_v55, %v2175_v31  ;;  %v1201_v41 = vmul.f32 %v1633_v55, %v2170_v15  ;;  %v2402_v55 = vpop.f32.mrb[2].mxu0 }
 0x3ab   : > { %v2375_v47 = vpop.eup %1634  ;;  %1147 = vadd.xlane.f32.xlu0 %v1146_v40 }
 0x3ac   : > { %v2377_v17 = vpop.eup %1636  ;;  %v1260_v58 = vpack.c.bf16 %v1202_v50, %v1200_v60  ;;  %v1094_v20 = vpop.xlane.xlu0 %1093  ;;  %v1259_v18 = vpack.c.bf16 %v1201_v41, %v1199_v16 }
 0x3ad   : > { %1648 = vrcp.f32 %v1094_v20  ;;  %v1149_v56 = vadd.f32 %v2377_v17, %v2375_v47  ;;  %v1639_v7 = vpop.eup %1638  ;;  %v2404_v60 = vpop.f32.mrb[3].mxu0 }
 0x3ae   : > { %1291 = vmatprep.subr.bf16.mxu0 %v1260_v58  ;;  %v1204_v10 = vmul.f32 %v1639_v7, %v2186_v11  ;;  %v1203_v57 = vmul.f32 %v1639_v7, %v2181_v22 }
 0x3af   : > { %v2381_v31 = vpop.eup %1640  ;;  %1292 = vmatpush1.bf16.xpose.msra.mxu0 %v1259_v18  ;;  %1150 = vadd.xlane.f32.xlu1 %v1149_v56 }
 0x3b0   : > { %v2383_v12 = vpop.eup %1642  ;;  %v1097_v15 = vpop.xlane.xlu1 %1096 }
 0x3b1   : > { %v1645_v0 = vpop.eup %1644  ;;  %v1152_v3 = vadd.f32 %v2383_v12, %v2381_v31  ;;  %1650 = vrcp.f32 %v1097_v15 }
 0x3b2   : > { %v1206_v19 = vmul.f32 %v1645_v0, %v2197_v1  ;;  %v1205_v24 = vmul.f32 %v1645_v0, %v2192_v61 }
 0x3b3   : > { %1153 = vadd.xlane.f32.xlu0 %v1152_v3  ;;  %v1647_v52 = vpop.eup %1646 }
 0x3b4   : > { %v1262_v13 = vpack.c.bf16 %v1206_v19, %v1204_v10  ;;  %v1100_v38 = vpop.xlane.xlu0 %1099  ;;  %v1261_v59 = vpack.c.bf16 %v1205_v24, %v1203_v57  ;;  %v1208_v44 = vmul.f32 %v1647_v52, %v2205_v49  ;;  %v1207_v22 = vmul.f32 %v1647_v52, %v2203_v8 }
 0x3b5   : > { %1652 = vrcp.f32 %v1100_v38 }
 0x3b6   : > { %1293 = vmatprep.subr.bf16.mxu0 %v1262_v13 }
 0x3b7   : > { %v1649_v37 = vpop.eup %1648  ;;  %1294 = vmatpush1.bf16.xpose.msra.mxu0 %v1261_v59 }
 0x3b8   : > { %v1103_v34 = vpop.xlane.xlu1 %1102  ;;  %v1210_v11 = vmul.f32 %v1649_v37, %v2213_v21  ;;  %v1209_v1 = vmul.f32 %v1649_v37, %v2211_v27 }
 0x3b9   : > { %1654 = vrcp.f32 %v1103_v34 }
 0x3ba   : > { %v1264_v61 = vpack.c.bf16 %v1210_v11, %v1208_v44  ;;  %v1263_v28 = vpack.c.bf16 %v1209_v1, %v1207_v22  ;;  %v2570_v22 = vld [vmem:[#allocation7_spill] sm:$0xff] }
 0x3bb   : > { %v1651_v46 = vpop.eup %1650 }
 0x3bc   : > { %1295 = vmatprep.subr.bf16.mxu0 %v1264_v61  ;;  %v1106_v25 = vpop.xlane.xlu0 %1105  ;;  %v1212_v21 = vmul.f32 %v1651_v46, %v2221_v23  ;;  %v1211_v43 = vmul.f32 %v1651_v46, %v2219_v30  ;;  %v309_v23 = vld [vmem:[%s2497_s3 + $0x8] sm:$0xf]  ;;  %v2573_v46 = vld [vmem:[#allocation6_spill] sm:$0xff] }
 0x3bd   : > { %1656 = vrcp.f32 %v1106_v25  ;;  %v2572_v25 = vld [vmem:[#allocation8_spill] sm:$0xff] }
 0x3bf   : > { %v1653_v54 = vpop.eup %1652  ;;  %1296 = vmatpush1.bf16.xpose.msra.mxu0 %v1263_v28  ;;  %v2571_v28 = vld [vmem:[#allocation9_spill] sm:$0xff] }
 0x3c0   : > { %v1109_v49 = vpop.xlane.xlu1 %1108  ;;  %v1214_v27 = vmul.f32 %v1653_v54, %v2229_v2  ;;  %v1213_v8 = vmul.f32 %v1653_v54, %v2227_v33  ;;  %301 = vperm.xlu1 %1496, %v293_v51  }
 0x3c1   : > { %1658 = vrcp.f32 %v1109_v49 }
 0x3c2   : > { %v1266_v40 = vpack.c.bf16 %v1214_v27, %v1212_v21  ;;  %v1265_v50 = vpack.c.bf16 %v1213_v8, %v1211_v43  ;;  %v2574_v8 = vld [vmem:[#allocation11_spill] sm:$0xff] }
 0x3c3   : > { %v1655_v41 = vpop.eup %1654 }
 0x3c4   : > { %1297 = vmatprep.subr.bf16.mxu0 %v1266_v40  ;;  %v1112_v16 = vpop.xlane.xlu0 %1111  ;;  %v1216_v30 = vmul.f32 %v1655_v41, %v2237_v5  ;;  %v1215_v18 = vmul.f32 %v1655_v41, %v2235_v36 }
 0x3c5   : > { %1660 = vrcp.f32 %v1112_v16  ;;  %v2575_v16 = vld [vmem:[#allocation10_spill] sm:$0xff] }
 0x3c7   : > { %v1657_v2 = vpop.eup %1656  ;;  %1298 = vmatpush1.bf16.xpose.msra.mxu0 %v1265_v50 }
 0x3c8   : > { %v1115_v33 = vpop.xlane.xlu1 %1114  ;;  %v1218_v58 = vmul.f32 %v1657_v2, %v2245_v63  ;;  %v1217_v20 = vmul.f32 %v1657_v2, %v2243_v39 }
 0x3c9   : > { %317 = vperm.xlu0 %1495, %v309_v23   ;;  %1662 = vrcp.f32 %v1115_v33 }
 0x3ca   : > { %v1268_v56 = vpack.c.bf16 %v1218_v58, %v1216_v30  ;;  %v1267_v7 = vpack.c.bf16 %v1217_v20, %v1215_v18  ;;  %v2576_v18 = vld [vmem:[#allocation14_spill] sm:$0xff] }
 0x3cb   : > { %v1659_v0 = vpop.eup %1658 }
 0x3cc   : > { %1299 = vmatprep.subr.bf16.mxu0 %v1268_v56  ;;  %v1118_v15 = vpop.xlane.xlu0 %1117  ;;  %v1220_v19 = vmul.f32 %v1659_v0, %v2253_v26  ;;  %v1219_v39 = vmul.f32 %v1659_v0, %v2251_v42 }
 0x3cd   : > { %1664 = vrcp.f32 %v1118_v15 }
 0x3cf   : > { %v1661_v3 = vpop.eup %1660  ;;  %1300 = vmatpush1.bf16.xpose.msra.mxu0 %v1267_v7  ;;  %v2577_v7 = vld [vmem:[#allocation13_spill] sm:$0xff] }
 0x3d0   : > { %v1121_v10 = vpop.xlane.xlu1 %1120  ;;  %v1222_v5 = vmul.f32 %v1661_v3, %v2261_v29  ;;  %v1221_v63 = vmul.f32 %v1661_v3, %v2259_v45 }
 0x3d1   : > { %1666 = vrcp.f32 %v1121_v10 }
 0x3d2   : > { %v1270_v57 = vpack.c.bf16 %v1222_v5, %v1220_v19  ;;  %v1269_v36 = vpack.c.bf16 %v1221_v63, %v1219_v39  ;;  %v2579_v5 = vld [vmem:[#allocation16_spill] sm:$0xff]  ;;  %v2580_v39 = vld [vmem:[#allocation18_spill] sm:$0xff] }
 0x3d3   : > { %v1663_v13 = vpop.eup %1662 }
 0x3d4   : > { %1301 = vmatprep.subr.bf16.mxu0 %v1270_v57  ;;  %v1124_v24 = vpop.xlane.xlu0 %1123  ;;  %v1224_v52 = vmul.f32 %v1663_v13, %v2269_v32  ;;  %v1223_v45 = vmul.f32 %v1663_v13, %v2267_v48  ;;  %v2582_v13 = vld [vmem:[#allocation15_spill] sm:$0xff] }
 0x3d5   : > { %1668 = vrcp.f32 %v1124_v24 }
 0x3d7   : > { %v1665_v38 = vpop.eup %1664  ;;  %1302 = vmatpush1.bf16.xpose.msra.mxu0 %v1269_v36  ;;  %v2581_v36 = vld [vmem:[#allocation17_spill] sm:$0xff] }
 0x3d8   : > { %v1127_v59 = vpop.xlane.xlu1 %1126  ;;  %v1226_v26 = vmul.f32 %v1665_v38, %v2277_v35  ;;  %v1225_v29 = vmul.f32 %v1665_v38, %v2275_v53 }
 0x3d9   : > { %1670 = vrcp.f32 %v1127_v59 }
 0x3da   : > { %v1272_v37 = vpack.c.bf16 %v1226_v26, %v1224_v52  ;;  %v1271_v42 = vpack.c.bf16 %v1225_v29, %v1223_v45 }
 0x3db   : > { %v1667_v44 = vpop.eup %1666 }
 0x3dc   : > { %1303 = vmatprep.subr.bf16.mxu0 %v1272_v37  ;;  %v1130_v34 = vpop.xlane.xlu0 %1129  ;;  %v1228_v61 = vmul.f32 %v1667_v44, %v2570_v22  ;;  %v1227_v53 = vmul.f32 %v1667_v44, %v2573_v46  ;;  %v2583_v44 = vld [vmem:[#allocation20_spill] sm:$0xff]  ;;  %v2584_v22 = vld [vmem:[#allocation19_spill] sm:$0xff] }
 0x3dd   : > { %1672 = vrcp.f32 %v1130_v34 }
 0x3df   : > { %v1669_v11 = vpop.eup %1668  ;;  %1304 = vmatpush1.bf16.xpose.msra.mxu0 %v1271_v42 }
 0x3e0   : > { %v1133_v1 = vpop.xlane.xlu1 %1132  ;;  %v1230_v32 = vmul.f32 %v1669_v11, %v2571_v28  ;;  %v1229_v35 = vmul.f32 %v1669_v11, %v2572_v25 }
 0x3e1   : > { %1674 = vrcp.f32 %v1133_v1 }
 0x3e2   : > { %v1274_v51 = vpack.c.bf16 %v1230_v32, %v1228_v61  ;;  %v1273_v48 = vpack.c.bf16 %v1229_v35, %v1227_v53 }
 0x3e3   : > { %v1671_v49 = vpop.eup %1670 }
 0x3e4   : > { %1305 = vmatprep.subr.bf16.mxu0 %v1274_v51  ;;  %v1136_v54 = vpop.xlane.xlu0 %1135  ;;  %v1232_v43 = vmul.f32 %v1671_v49, %v2574_v8  ;;  %v1231_v41 = vmul.f32 %v1671_v49, %v2575_v16 }
 0x3e5   : > { %1676 = vrcp.f32 %v1136_v54 }
 0x3e7   : > { %v1673_v21 = vpop.eup %1672  ;;  %1306 = vmatpush1.bf16.xpose.msra.mxu0 %v1273_v48 }
 0x3e8   : > { %v1139_v27 = vpop.xlane.xlu1 %1138  ;;  %v1234_v40 = vmul.f32 %v1673_v21, %v2309_v14  ;;  %v1233_v50 = vmul.f32 %v1673_v21, %v2307_v4  ;;  %v2578_v14 = vld [vmem:[#allocation12_spill] sm:$0xff] }
 0x3e9   : > { %1678 = vrcp.f32 %v1139_v27 }
 0x3ea   : > { %v1276_v23 = vpack.c.bf16 %v1234_v40, %v1232_v43  ;;  %v1275_v2 = vpack.c.bf16 %v1233_v50, %v1231_v41 }
 0x3eb   : > { %v1675_v30 = vpop.eup %1674 }
 0x3ec   : > { %1307 = vmatprep.subr.bf16.mxu0 %v1276_v23  ;;  %v1142_v33 = vpop.xlane.xlu0 %1141  ;;  %v1236_v20 = vmul.f32 %v1675_v30, %v2317_v62  ;;  %v1235_v0 = vmul.f32 %v1675_v30, %v2578_v14 }
 0x3ed   : > { %1680 = vrcp.f32 %v1142_v33 }
 0x3ef   : > { %v1677_v58 = vpop.eup %1676  ;;  %1308 = vmatpush1.bf16.xpose.msra.mxu0 %v1275_v2 }
 0x3f0   : > { %v1238_v56 = vmul.f32 %v1677_v58, %v2576_v18  ;;  %v1237_v15 = vmul.f32 %v1677_v58, %v2577_v7  ;;  %v1145_v52 = vpop.xlane.xlu1 %1144 }
 0x3f1   : > { %1682 = vrcp.f32 %v1145_v52 }
 0x3f2   : > { %v1278_v4 = vpack.c.bf16 %v1238_v56, %v1236_v20  ;;  %v1277_v3 = vpack.c.bf16 %v1237_v15, %v1235_v0 }
 0x3f3   : > { %v1679_v10 = vpop.eup %1678 }
 0x3f4   : > { %1309 = vmatprep.subr.bf16.mxu0 %v1278_v4  ;;  %v1240_v63 = vmul.f32 %v1679_v10, %v2579_v5  ;;  %v1239_v62 = vmul.f32 %v1679_v10, %v2582_v13 }
 0x3f7   : > { %v1681_v19 = vpop.eup %1680  ;;  %1310 = vmatpush1.bf16.xpose.msra.mxu0 %v1277_v3 }
 0x3f8   : > { %v1242_v57 = vmul.f32 %v1681_v19, %v2580_v39  ;;  %v1241_v24 = vmul.f32 %v1681_v19, %v2581_v36 }
 0x3fa   : > { %v1280_v38 = vpack.c.bf16 %v1242_v57, %v1240_v63  ;;  %v1279_v59 = vpack.c.bf16 %v1241_v24, %v1239_v62 }
 0x3fb   : > { %v1683_v37 = vpop.eup %1682 }
 0x3fc   : > { %1311 = vmatprep.subr.bf16.mxu0 %v1280_v38  ;;  %v1244_v11 = vmul.f32 %v1683_v37, %v2583_v44  ;;  %v1243_v61 = vmul.f32 %v1683_v37, %v2584_v22 }
 0x3ff   : > { %1312 = vmatpush1.bf16.xpose.msra.mxu0 %v1279_v59 }
 0x438   : > { %v1148_v26 = vpop.xlane.xlu0 %1147 }
 0x439   : > { %1684 = vrcp.f32 %v1148_v26 }
 0x43c   : > { %v1151_v29 = vpop.xlane.xlu1 %1150 }
 0x43d   : > { %1686 = vrcp.f32 %v1151_v29 }
 0x440   : > { %v1154_v45 = vpop.xlane.xlu0 %1153  ;;  %v302_v42 = vpop.permute.xlu1 %301 }
 0x441   : > { %1688 = vrcp.f32 %v1154_v45  ;;  %v306_v32 = vmul.f32 %v302_v42, %v2402_v55  ;;  %v307_v25 = vmul.f32 %v302_v42, %v2404_v60 }
 0x443   : > { %v1685_v34 = vpop.eup %1684 }
 0x444   : > { %v1246_v1 = vmul.f32 %v1685_v34, %v2367_v9  ;;  %v1245_v28 = vmul.f32 %v1685_v34, %v2365_v6 }
 0x446   : > { %v1282_v35 = vpack.c.bf16 %v1246_v1, %v1244_v11  ;;  %v1281_v46 = vpack.c.bf16 %v1245_v28, %v1243_v61 }
 0x447   : > { %v1687_v51 = vpop.eup %1686 }
 0x448   : > { %1313 = vmatprep.subr.bf16.mxu0 %v1282_v35  ;;  %v318_v53 = vpop.permute.xlu0 %317  ;;  %v1248_v9 = vmul.f32 %v1687_v51, %v2377_v17  ;;  %v1247_v55 = vmul.f32 %v1687_v51, %v2375_v47 }
 0x449   : > { %v322_v48 = vadd.f32 %v318_v53, %v306_v32  ;;  %v323_v54 = vadd.f32 %v318_v53, %v307_v25  ;;  %1314 = vmatpush1.bf16.xpose.msra.mxu0 %v1281_v46 }
 0x44b   : > { %v1689_v49 = vpop.eup %1688  ;;  %347 = vst [vmem:[#allocation2 + $0x10] sm:$0xf] %v322_v48  ;;  %348 = vst [vmem:[#allocation2 + $0x18] sm:$0xf] %v323_v54 }
 0x44c   : > { %v1250_v6 = vmul.f32 %v1689_v49, %v2383_v12  ;;  %v1249_v60 = vmul.f32 %v1689_v49, %v2381_v31 }
 0x44e   : > { %v1284_v21 = vpack.c.bf16 %v1250_v6, %v1248_v9  ;;  %v1283_v27 = vpack.c.bf16 %v1249_v60, %v1247_v55 }
 0x450   : > { %1315 = vmatprep.subr.bf16.mxu0 %v1284_v21 }
 0x451   : > { %1316 = vmatpush1.bf16.xpose.msra.mxu0 %v1283_v27 }
 0x452   : > { %v352_v8 = vld [vmem:[#allocation2 + $0x18] sm:$0xf]  ;;  %v351_v40 = vld [vmem:[#allocation2 + $0x10] sm:$0xf] }
 0x453   : > { %v1252_v43 = vpack.c.bf16 %v352_v8, %v352_v8  ;;  %v1251_v50 = vpack.c.bf16 %v351_v40, %v351_v40 }
 0x455   : > { %1317 = vmatprep.mubr.bf16.mxu0 %v1252_v43 }
 0x458   : > { %1318 = vmatmul.mubr.bf16.vlgmr.msra.gmra.mrb[4].mxu0 %v1251_v50 }
 0x52b   : > { %v1319_v17 = vpop.f32.mrb[4].mxu0 }
 0x52c   : > { %v1321_v47 = vpop.f32.mrb[5].mxu0 }
 0x52d   : > { %v1328_v12 = vcombine.low %v1319_v17, %v1321_v47  ;;  %v1323_v31 = vpop.f32.mrb[6].mxu0 }
 0x52e   : > { %v1324_v16 = vpop.f32.mrb[7].mxu0 }
 0x52f   : > { %1330 = vst [vmem:[%s191_s30] sm:$0xff] %v1328_v12 }
 0x530   : > { %1703 = shalt.err (!%p1700_p3)
}
 0x531   : > { %s1704_s13 = scalar_lea.hbm %s2452_s8, 128  ;;  %s1708_s22 = scalar_lea.hbm %s2498_s4, 256 }
 0x532   : > { %p1705_p4 = scmp.ne.s32.totalorder %s2452_s8, %s1704_s13  ;;  %p1709_p9 = scmp.lt.u32.totalorder %s2452_s8, %s2498_s4 }
 0x533   : > { %p1710_p10 = scmp.lt.u32.totalorder %s1708_s22, %s1704_s13  ;;  %p1712_p12 = scmp.lt.u32.totalorder %s1704_s13, %s2452_s8 }
 0x534   : > { %p1706_p7 = pnand %p1705_p4, %p1820_p5 }
 0x535   : > { %p1711_p11 = por %p1710_p10, %p1709_p9 }
 0x536   : > { %p1707_p8 = pneg %p1706_p7 }
 0x537   : > { %p1713_p13 = por %p1712_p12, %p1711_p11 }
 0x539   : > { %p1714_p0 = pnand %p1713_p13, %p1707_p8 }
 0x53b   : > { %1717 = shalt.err (!%p1714_p0)
}
 0x53c   : > { %1454 = dma.vmem_to_hbm [thread:$0]  (%p1820_p5), %s2454_s5, 128, %s2452_s8, %s1332_s9  }
 0x53d PF: > { %p1460_p1 = scmp.ge.s32.totalorder %s1752_s18, 2  ;;  %s1358_s28 = sand.u32 1, %s1740_s15  }
 0x53e   : > { %s1359_s29 = scalar_lea.sflag [#allocation4], %s1358_s28 }
 0x53f   : > { %p1457_p2 = pnand %p1460_p1, %p1824_p6 }
 0x541   : > { %1735 = dma.done.wait (!%p1457_p2), %s1359_s29, 128  }
 0x542   : > { %1737 = vsyncadd (!%p1457_p2), %s1359_s29, 4294967168  ;;  %p14_p3 = scmp.ge.s32.totalorder %s1807_s21, 4   ;;  %s2585_s15 = smov %s1744_s16 }
 0x543   : > { %s2586_s16 = smov %s1748_s17  ;;  %s2587_s17 = smov %s1818_s24 }
 0x544   : > { %s2588_s18 = smov %s1807_s21  ;;  %16 = sbr.rel (!%p14_p3) target bundleno = 3 (0x3), region = 71 }
 0x54b   :  { %1364 = vsyncpa [#allocation4], 1 }
 0x54c   :  { %1366 = vsyncpa [#allocation4 + $0x1], 1 }

</bundles_post_ra>
